<compile_context>
chip_gen: v7x
topology: tpu7x:2x2x1
jax: 0.10.0
libtpu: 0.0.40
codegen_flags: <defaults>
</compile_context>

<pallas_src>
import functools
import math

import jax
import jax.numpy as jnp
from jax.experimental import pallas as pl
from jax.experimental.pallas import tpu as pltpu


# ---------------------------------------------------------------------------
# Kernel helpers
# ---------------------------------------------------------------------------
def _layer_norm(x, g, b, eps=1e-6):
    mean = jnp.mean(x, axis=-1, keepdims=True)
    var = jnp.mean((x - mean) ** 2, axis=-1, keepdims=True)
    return (x - mean) * jax.lax.rsqrt(var + eps) * g + b


# ---------------------------------------------------------------------------
# Kernel
# ---------------------------------------------------------------------------
def decoder_layer_kernel(
        tgt_ref, enc_ref, tmask_ref, emask_ref,
        wqkv1_ref, bqkv1_ref, wo1_ref, bo1_ref,
        wq2_ref, bq2_ref, wkv2_ref, bkv2_ref, wo2_ref, bo2_ref,
        w1_ref, b1_ref, w2_ref, b2_ref,
        lng_ref, lnb_ref,
        out_ref, attn_ref,
        *, n_head):
    f32 = jnp.float32
    bf16 = jnp.bfloat16

    tgt = tgt_ref[0]              # (T, H) f32
    enc = enc_ref[0]              # (S, H) f32
    # additive mask bias, computed once per batch (replaces per-head where())
    tbias = (tmask_ref[0] - 1.0) * 1e9    # (T, T)
    ebias = (emask_ref[0] - 1.0) * 1e9    # (T, S)
    ln_g = lng_ref[0]             # (H,)
    ln_b = lnb_ref[0]             # (H,)

    H = tgt.shape[-1]
    dk = H // n_head
    scale = 1.0 / math.sqrt(dk)

    def split_heads(x2d):
        # (N, n_head*dk) -> (n_head, N, dk) via lane slices + major-dim stack
        return jnp.stack([x2d[:, h * dk:(h + 1) * dk] for h in range(n_head)],
                         axis=0)

    def merge_heads(xh):
        # (n_head, N, dk) -> (N, H)
        return jnp.concatenate([xh[h] for h in range(n_head)], axis=-1)

    def attention(q, k, v, bias):
        # q: (n_head, T, dk), k/v: (n_head, S, dk) f32; bias: (T, S) additive.
        s = jnp.einsum('htd,hsd->hts', q.astype(bf16), k.astype(bf16),
                       preferred_element_type=f32) * scale
        s = s + bias[None, :, :]
        s = s - jnp.max(s, axis=-1, keepdims=True)
        p = jnp.exp(s)
        attn = p * pl.reciprocal(jnp.sum(p, axis=-1, keepdims=True), approx=True)
        ctx = jnp.einsum('hts,hsd->htd', attn.astype(bf16), v.astype(bf16),
                         preferred_element_type=f32)
        return attn, ctx

    # --- self attention (fused QKV) + residual ---
    qkv = jnp.dot(tgt.astype(bf16), wqkv1_ref[...],
                  preferred_element_type=f32) + bqkv1_ref[0]          # (T, 3H)
    q = split_heads(qkv[:, :H])
    k = split_heads(qkv[:, H:2 * H])
    v = split_heads(qkv[:, 2 * H:])
    _, ctx = attention(q, k, v, tbias)
    sa = jnp.dot(merge_heads(ctx).astype(bf16), wo1_ref[...],
                 preferred_element_type=f32) + bo1_ref[0]
    output = tgt + sa
    norm_output = _layer_norm(output, ln_g, ln_b)

    # --- encoder (cross) attention (fused KV) + residual; attn map is returned ---
    q2 = jnp.dot(norm_output.astype(bf16), wq2_ref[...],
                 preferred_element_type=f32) + bq2_ref[0]             # (T, H)
    kv = jnp.dot(enc.astype(bf16), wkv2_ref[...],
                 preferred_element_type=f32) + bkv2_ref[0]            # (S, 2H)
    q = split_heads(q2)
    k = split_heads(kv[:, :H])
    v = split_heads(kv[:, H:])
    attn, ctx = attention(q, k, v, ebias)
    # single store of the whole (n_head, T, S) map (no per-head partial stores)
    # TODO(synk): at realistic sizes pad S to a multiple of 128 and emit bf16 to keep
    #             this store unmasked / halve HBM writeback.
    attn_ref[0] = attn.astype(attn_ref.dtype)
    ca = jnp.dot(merge_heads(ctx).astype(bf16), wo2_ref[...],
                 preferred_element_type=f32) + bo2_ref[0]
    output = output + ca
    norm_output = _layer_norm(output, ln_g, ln_b)

    # --- position-wise FFN + residual ---
    # TODO(synk): at realistic H/FFN sizes, tile T and chunk the FFN hidden dim
    #             (grid axis + pl.when accumulator) instead of the monolithic block.
    hdn = jnp.dot(norm_output.astype(bf16), w1_ref[...],
                  preferred_element_type=f32) + b1_ref[0]
    hdn = jnp.maximum(hdn, 0.0)
    ffn = jnp.dot(hdn.astype(bf16), w2_ref[...],
                  preferred_element_type=f32) + b2_ref[0]
    output = _layer_norm(output + ffn, ln_g, ln_b)

    out_ref[0] = output.astype(out_ref.dtype)


# ---------------------------------------------------------------------------
# Wrapper
# ---------------------------------------------------------------------------
def decoder_layer(target, encoder_output, target_mask, dec_enc_mask, params, n_head):
    B, T, H = target.shape
    S = encoder_output.shape[1]
    bf16 = jnp.bfloat16
    p = params

    # Fuse projections and cast weights to bf16 once (biases stay f32 and are
    # added to the f32 accumulators inside the kernel).
    wqkv1 = jnp.concatenate([p["sa_wq"], p["sa_wk"], p["sa_wv"]], axis=1).astype(bf16)
    bqkv1 = jnp.concatenate([p["sa_bq"], p["sa_bk"], p["sa_bv"]], axis=1)
    wo1, bo1 = p["sa_wo"].astype(bf16), p["sa_bo"]
    wq2, bq2 = p["ca_wq"].astype(bf16), p["ca_bq"]
    wkv2 = jnp.concatenate([p["ca_wk"], p["ca_wv"]], axis=1).astype(bf16)
    bkv2 = jnp.concatenate([p["ca_bk"], p["ca_bv"]], axis=1)
    wo2, bo2 = p["ca_wo"].astype(bf16), p["ca_bo"]
    w1, b1 = p["w1"].astype(bf16), p["b1"]
    w2, b2 = p["w2"].astype(bf16), p["b2"]
    lng, lnb = p["ln_g"], p["ln_b"]

    param_list = [wqkv1, bqkv1, wo1, bo1,
                  wq2, bq2, wkv2, bkv2, wo2, bo2,
                  w1, b1, w2, b2, lng, lnb]

    in_specs = [
        pl.BlockSpec((1, T, H), lambda b: (b, 0, 0)),
        pl.BlockSpec((1, S, H), lambda b: (b, 0, 0)),
        pl.BlockSpec((1, T, T), lambda b: (b, 0, 0)),
        pl.BlockSpec((1, T, S), lambda b: (b, 0, 0)),
    ] + [pl.BlockSpec(w.shape, lambda b: (0, 0)) for w in param_list]

    out_specs = [
        pl.BlockSpec((1, T, H), lambda b: (b, 0, 0)),
        pl.BlockSpec((1, n_head, T, S), lambda b: (b, 0, 0, 0)),
    ]
    out_shape = (
        jax.ShapeDtypeStruct((B, T, H), jnp.float32),
        jax.ShapeDtypeStruct((B, n_head, T, S), jnp.float32),
    )

    kernel = functools.partial(decoder_layer_kernel, n_head=n_head)
    return pl.pallas_call(
        kernel,
        out_shape=out_shape,
        grid_spec=pltpu.PrefetchScalarGridSpec(
            num_scalar_prefetch=0,
            grid=(B,),
            in_specs=in_specs,
            out_specs=out_specs,
        ),
        compiler_params=pltpu.CompilerParams(
            dimension_semantics=("parallel",),
            vmem_limit_bytes=32 * 1024 * 1024,
        ),
    )(target, encoder_output, target_mask, dec_enc_mask, *param_list)


# ---------------------------------------------------------------------------
# Pure-JAX f32 reference (mirrors the PyTorch forward exactly)
# ---------------------------------------------------------------------------
def ref_decoder_layer(target, enc, tmask, emask, p, n_head):
    def ln(x):
        m = jnp.mean(x, -1, keepdims=True)
        v = jnp.mean((x - m) ** 2, -1, keepdims=True)
        return (x - m) / jnp.sqrt(v + 1e-6) * p["ln_g"][0] + p["ln_b"][0]

    def mha(q_in, kv_in, mask, pre):
        q = q_in @ p[pre + "wq"] + p[pre + "bq"][0]
        k = kv_in @ p[pre + "wk"] + p[pre + "bk"][0]
        v = kv_in @ p[pre + "wv"] + p[pre + "bv"][0]
        B, T, H = q.shape
        S = k.shape[1]
        dk = H // n_head
        q = q.reshape(B, T, n_head, dk).transpose(0, 2, 1, 3)
        k = k.reshape(B, S, n_head, dk).transpose(0, 2, 1, 3)
        v = v.reshape(B, S, n_head, dk).transpose(0, 2, 1, 3)
        sc = jnp.einsum("bhtd,bhsd->bhts", q, k) / math.sqrt(dk)
        sc = jnp.where(mask[:, None, :, :] == 0, -1e9, sc)
        attn = jax.nn.softmax(sc, -1)
        ctx = jnp.einsum("bhts,bhsd->bhtd", attn, v)
        ctx = ctx.transpose(0, 2, 1, 3).reshape(B, T, H)
        return ctx @ p[pre + "wo"] + p[pre + "bo"][0], attn

    out = target + mha(target, target, tmask, "sa_")[0]
    n = ln(out)
    sub, amap = mha(n, enc, emask, "ca_")
    out = out + sub
    n = ln(out)
    ffn = jnp.maximum(n @ p["w1"] + p["b1"][0], 0.0) @ p["w2"] + p["b2"][0]
    out = ln(out + ffn)
    return out, amap


# ---------------------------------------------------------------------------
# Main
# ---------------------------------------------------------------------------
if __name__ == "__main__":
    B, T, S = 2, 8, 8
    H, FFN, N_HEAD = 32, 64, 4

    key = jax.random.PRNGKey(0)
    keys = iter(jax.random.split(key, 40))

    def w(shape, scale=0.1):
        return (scale * jax.random.normal(next(keys), shape)).astype(jnp.float32)

    params = {}
    for pre in ("sa_", "ca_"):
        for name in ("q", "k", "v", "o"):
            params[pre + "w" + name] = w((H, H))
            params[pre + "b" + name] = w((1, H))
    params["w1"] = w((H, FFN))
    params["b1"] = w((1, FFN))
    params["w2"] = w((FFN, H))
    params["b2"] = w((1, H))
    params["ln_g"] = jnp.ones((1, H), jnp.float32)
    params["ln_b"] = jnp.zeros((1, H), jnp.float32)

    target = jax.random.normal(next(keys), (B, T, H), jnp.float32)
    enc_out = jax.random.normal(next(keys), (B, S, H), jnp.float32)
    # causal self-attn mask, full cross-attn mask (float {0,1})
    tgt_mask = jnp.tril(jnp.ones((T, T), jnp.float32))[None].repeat(B, axis=0)
    dec_enc_mask = jnp.ones((B, T, S), jnp.float32)

    out, attn_map = decoder_layer(target, enc_out, tgt_mask, dec_enc_mask,
                                  params, N_HEAD)
    jax.block_until_ready((out, attn_map))

    ref_out, ref_attn = ref_decoder_layer(target, enc_out, tgt_mask,
                                          dec_enc_mask, params, N_HEAD)
    assert out.shape == (B, T, H) and attn_map.shape == (B, N_HEAD, T, S)
    # bf16 matmul inputs (f32 accumulation) => compare against the f32 reference
    # at bf16-appropriate tolerance.
    assert jnp.allclose(out, ref_out, atol=2e-2, rtol=2e-2)
    assert jnp.allclose(attn_map, ref_attn, atol=2e-2, rtol=2e-2)
    print("KERNEL_OK")
</pallas_src>

<mosaic_0001>
module attributes {stable_mosaic.version = 11 : i64} {
  func.func @decoder_layer_kernel(%arg0: i32, %arg1: memref<1x8x32xf32, #tpu.memory_space<vmem>>, %arg2: memref<1x8x32xf32, #tpu.memory_space<vmem>>, %arg3: memref<1x8x8xf32, #tpu.memory_space<vmem>>, %arg4: memref<1x8x8xf32, #tpu.memory_space<vmem>>, %arg5: memref<32x96xbf16, #tpu.memory_space<vmem>>, %arg6: memref<1x96xf32, #tpu.memory_space<vmem>>, %arg7: memref<32x32xbf16, #tpu.memory_space<vmem>>, %arg8: memref<1x32xf32, #tpu.memory_space<vmem>>, %arg9: memref<32x32xbf16, #tpu.memory_space<vmem>>, %arg10: memref<1x32xf32, #tpu.memory_space<vmem>>, %arg11: memref<32x64xbf16, #tpu.memory_space<vmem>>, %arg12: memref<1x64xf32, #tpu.memory_space<vmem>>, %arg13: memref<32x32xbf16, #tpu.memory_space<vmem>>, %arg14: memref<1x32xf32, #tpu.memory_space<vmem>>, %arg15: memref<32x64xbf16, #tpu.memory_space<vmem>>, %arg16: memref<1x64xf32, #tpu.memory_space<vmem>>, %arg17: memref<64x32xbf16, #tpu.memory_space<vmem>>, %arg18: memref<1x32xf32, #tpu.memory_space<vmem>>, %arg19: memref<1x32xf32, #tpu.memory_space<vmem>>, %arg20: memref<1x32xf32, #tpu.memory_space<vmem>>, %arg21: memref<1x8x32xf32, #tpu.memory_space<vmem>>, %arg22: memref<1x4x8x8xf32, #tpu.memory_space<vmem>>) attributes {dimension_semantics = [#tpu.dimension_semantics<parallel>], iteration_bounds = array<i64: 2>, scalar_prefetch = 0 : i64, scratch_operands = 0 : i64, tpu.core_type = #tpu.core_type<tc>, window_params = [{transform_indices = @transform_0, window_bounds = array<i64: 1, 8, 32>}, {transform_indices = @transform_1, window_bounds = array<i64: 1, 8, 32>}, {transform_indices = @transform_2, window_bounds = array<i64: 1, 8, 8>}, {transform_indices = @transform_3, window_bounds = array<i64: 1, 8, 8>}, {pipeline_mode = #tpu.pipeline_mode<synchronous>, transform_indices = @transform_4, window_bounds = array<i64: 32, 96>}, {pipeline_mode = #tpu.pipeline_mode<synchronous>, transform_indices = @transform_5, window_bounds = array<i64: 1, 96>}, {pipeline_mode = #tpu.pipeline_mode<synchronous>, transform_indices = @transform_6, window_bounds = array<i64: 32, 32>}, {pipeline_mode = #tpu.pipeline_mode<synchronous>, transform_indices = @transform_7, window_bounds = array<i64: 1, 32>}, {pipeline_mode = #tpu.pipeline_mode<synchronous>, transform_indices = @transform_8, window_bounds = array<i64: 32, 32>}, {pipeline_mode = #tpu.pipeline_mode<synchronous>, transform_indices = @transform_9, window_bounds = array<i64: 1, 32>}, {pipeline_mode = #tpu.pipeline_mode<synchronous>, transform_indices = @transform_10, window_bounds = array<i64: 32, 64>}, {pipeline_mode = #tpu.pipeline_mode<synchronous>, transform_indices = @transform_11, window_bounds = array<i64: 1, 64>}, {pipeline_mode = #tpu.pipeline_mode<synchronous>, transform_indices = @transform_12, window_bounds = array<i64: 32, 32>}, {pipeline_mode = #tpu.pipeline_mode<synchronous>, transform_indices = @transform_13, window_bounds = array<i64: 1, 32>}, {pipeline_mode = #tpu.pipeline_mode<synchronous>, transform_indices = @transform_14, window_bounds = array<i64: 32, 64>}, {pipeline_mode = #tpu.pipeline_mode<synchronous>, transform_indices = @transform_15, window_bounds = array<i64: 1, 64>}, {pipeline_mode = #tpu.pipeline_mode<synchronous>, transform_indices = @transform_16, window_bounds = array<i64: 64, 32>}, {pipeline_mode = #tpu.pipeline_mode<synchronous>, transform_indices = @transform_17, window_bounds = array<i64: 1, 32>}, {pipeline_mode = #tpu.pipeline_mode<synchronous>, transform_indices = @transform_18, window_bounds = array<i64: 1, 32>}, {pipeline_mode = #tpu.pipeline_mode<synchronous>, transform_indices = @transform_19, window_bounds = array<i64: 1, 32>}, {transform_indices = @transform_20, window_bounds = array<i64: 1, 8, 32>}, {transform_indices = @transform_21, window_bounds = array<i64: 1, 4, 8, 8>}]} {
    %c0 = arith.constant 0 : index
    %c0_0 = arith.constant 0 : index
    %c0_1 = arith.constant 0 : index
    %0 = vector.load %arg1[%c0, %c0_0, %c0_1] : memref<1x8x32xf32, #tpu.memory_space<vmem>>, vector<1x8x32xf32>
    %1 = vector.shape_cast %0 : vector<1x8x32xf32> to vector<8x32xf32>
    %c0_2 = arith.constant 0 : index
    %c0_3 = arith.constant 0 : index
    %c0_4 = arith.constant 0 : index
    %2 = vector.load %arg2[%c0_2, %c0_3, %c0_4] : memref<1x8x32xf32, #tpu.memory_space<vmem>>, vector<1x8x32xf32>
    %3 = vector.shape_cast %2 : vector<1x8x32xf32> to vector<8x32xf32>
    %c0_5 = arith.constant 0 : index
    %c0_6 = arith.constant 0 : index
    %c0_7 = arith.constant 0 : index
    %4 = vector.load %arg3[%c0_5, %c0_6, %c0_7] : memref<1x8x8xf32, #tpu.memory_space<vmem>>, vector<1x8x8xf32>
    %5 = vector.shape_cast %4 : vector<1x8x8xf32> to vector<8x8xf32>
    %cst = arith.constant 1.000000e+00 : f32
    %6 = vector.broadcast %cst : f32 to vector<8x8xf32>
    %7 = arith.subf %5, %6 : vector<8x8xf32>
    %cst_8 = arith.constant 1.000000e+09 : f32
    %8 = vector.broadcast %cst_8 : f32 to vector<8x8xf32>
    %9 = arith.mulf %7, %8 : vector<8x8xf32>
    %c0_9 = arith.constant 0 : index
    %c0_10 = arith.constant 0 : index
    %c0_11 = arith.constant 0 : index
    %10 = vector.load %arg4[%c0_9, %c0_10, %c0_11] : memref<1x8x8xf32, #tpu.memory_space<vmem>>, vector<1x8x8xf32>
    %11 = vector.shape_cast %10 : vector<1x8x8xf32> to vector<8x8xf32>
    %cst_12 = arith.constant 1.000000e+00 : f32
    %12 = vector.broadcast %cst_12 : f32 to vector<8x8xf32>
    %13 = arith.subf %11, %12 : vector<8x8xf32>
    %cst_13 = arith.constant 1.000000e+09 : f32
    %14 = vector.broadcast %cst_13 : f32 to vector<8x8xf32>
    %15 = arith.mulf %13, %14 : vector<8x8xf32>
    %c0_14 = arith.constant 0 : index
    %c0_15 = arith.constant 0 : index
    %16 = vector.load %arg19[%c0_14, %c0_15] : memref<1x32xf32, #tpu.memory_space<vmem>>, vector<1x32xf32>
    %17 = vector.shape_cast %16 : vector<1x32xf32> to vector<32xf32>
    %c0_16 = arith.constant 0 : index
    %c0_17 = arith.constant 0 : index
    %18 = vector.load %arg20[%c0_16, %c0_17] : memref<1x32xf32, #tpu.memory_space<vmem>>, vector<1x32xf32>
    %19 = vector.shape_cast %18 : vector<1x32xf32> to vector<32xf32>
    %20 = arith.truncf %1 : vector<8x32xf32> to vector<8x32xbf16>
    %c0_18 = arith.constant 0 : index
    %c0_19 = arith.constant 0 : index
    %21 = vector.load %arg5[%c0_18, %c0_19] : memref<32x96xbf16, #tpu.memory_space<vmem>>, vector<32x96xbf16>
    %cst_20 = arith.constant dense<0.000000e+00> : vector<8x96xf32>
    %22 = tpu.matmul %20, %21, %cst_20 {dimension_numbers = #tpu.dot_dimension_numbers<[1], [0], [0], [1], [0, 0, 1, 1], [], []>} : vector<8x32xbf16>, vector<32x96xbf16>, vector<8x96xf32> -> vector<8x96xf32>
    %c0_21 = arith.constant 0 : index
    %c0_22 = arith.constant 0 : index
    %23 = vector.load %arg6[%c0_21, %c0_22] : memref<1x96xf32, #tpu.memory_space<vmem>>, vector<1x96xf32>
    %24 = vector.shape_cast %23 : vector<1x96xf32> to vector<96xf32>
    %25 = vector.shape_cast %24 : vector<96xf32> to vector<1x96xf32>
    %26 = vector.broadcast %25 : vector<1x96xf32> to vector<8x96xf32>
    %27 = arith.addf %22, %26 : vector<8x96xf32>
    %28 = vector.extract_strided_slice %27 {offsets = [0, 0], sizes = [8, 32], strides = [1, 1]} : vector<8x96xf32> to vector<8x32xf32>
    %29 = vector.extract_strided_slice %28 {offsets = [0, 0], sizes = [8, 8], strides = [1, 1]} : vector<8x32xf32> to vector<8x8xf32>
    %30 = vector.extract_strided_slice %28 {offsets = [0, 8], sizes = [8, 8], strides = [1, 1]} : vector<8x32xf32> to vector<8x8xf32>
    %31 = vector.extract_strided_slice %28 {offsets = [0, 16], sizes = [8, 8], strides = [1, 1]} : vector<8x32xf32> to vector<8x8xf32>
    %32 = vector.extract_strided_slice %28 {offsets = [0, 24], sizes = [8, 8], strides = [1, 1]} : vector<8x32xf32> to vector<8x8xf32>
    %33 = vector.shape_cast %29 : vector<8x8xf32> to vector<1x8x8xf32>
    %34 = vector.shape_cast %30 : vector<8x8xf32> to vector<1x8x8xf32>
    %35 = vector.shape_cast %31 : vector<8x8xf32> to vector<1x8x8xf32>
    %36 = vector.shape_cast %32 : vector<8x8xf32> to vector<1x8x8xf32>
    %37 = tpu.concatenate %33, %34, %35, %36 in 0 : vector<1x8x8xf32>, vector<1x8x8xf32>, vector<1x8x8xf32>, vector<1x8x8xf32> -> vector<4x8x8xf32>
    %38 = vector.extract_strided_slice %27 {offsets = [0, 32], sizes = [8, 32], strides = [1, 1]} : vector<8x96xf32> to vector<8x32xf32>
    %39 = vector.extract_strided_slice %38 {offsets = [0, 0], sizes = [8, 8], strides = [1, 1]} : vector<8x32xf32> to vector<8x8xf32>
    %40 = vector.extract_strided_slice %38 {offsets = [0, 8], sizes = [8, 8], strides = [1, 1]} : vector<8x32xf32> to vector<8x8xf32>
    %41 = vector.extract_strided_slice %38 {offsets = [0, 16], sizes = [8, 8], strides = [1, 1]} : vector<8x32xf32> to vector<8x8xf32>
    %42 = vector.extract_strided_slice %38 {offsets = [0, 24], sizes = [8, 8], strides = [1, 1]} : vector<8x32xf32> to vector<8x8xf32>
    %43 = vector.shape_cast %39 : vector<8x8xf32> to vector<1x8x8xf32>
    %44 = vector.shape_cast %40 : vector<8x8xf32> to vector<1x8x8xf32>
    %45 = vector.shape_cast %41 : vector<8x8xf32> to vector<1x8x8xf32>
    %46 = vector.shape_cast %42 : vector<8x8xf32> to vector<1x8x8xf32>
    %47 = tpu.concatenate %43, %44, %45, %46 in 0 : vector<1x8x8xf32>, vector<1x8x8xf32>, vector<1x8x8xf32>, vector<1x8x8xf32> -> vector<4x8x8xf32>
    %48 = vector.extract_strided_slice %27 {offsets = [0, 64], sizes = [8, 32], strides = [1, 1]} : vector<8x96xf32> to vector<8x32xf32>
    %49 = vector.extract_strided_slice %48 {offsets = [0, 0], sizes = [8, 8], strides = [1, 1]} : vector<8x32xf32> to vector<8x8xf32>
    %50 = vector.extract_strided_slice %48 {offsets = [0, 8], sizes = [8, 8], strides = [1, 1]} : vector<8x32xf32> to vector<8x8xf32>
    %51 = vector.extract_strided_slice %48 {offsets = [0, 16], sizes = [8, 8], strides = [1, 1]} : vector<8x32xf32> to vector<8x8xf32>
    %52 = vector.extract_strided_slice %48 {offsets = [0, 24], sizes = [8, 8], strides = [1, 1]} : vector<8x32xf32> to vector<8x8xf32>
    %53 = vector.shape_cast %49 : vector<8x8xf32> to vector<1x8x8xf32>
    %54 = vector.shape_cast %50 : vector<8x8xf32> to vector<1x8x8xf32>
    %55 = vector.shape_cast %51 : vector<8x8xf32> to vector<1x8x8xf32>
    %56 = vector.shape_cast %52 : vector<8x8xf32> to vector<1x8x8xf32>
    %57 = tpu.concatenate %53, %54, %55, %56 in 0 : vector<1x8x8xf32>, vector<1x8x8xf32>, vector<1x8x8xf32>, vector<1x8x8xf32> -> vector<4x8x8xf32>
    %58 = arith.truncf %37 : vector<4x8x8xf32> to vector<4x8x8xbf16>
    %59 = arith.truncf %47 : vector<4x8x8xf32> to vector<4x8x8xbf16>
    "tpu.trace_start"() <{level = 10 : i32, message = "htd,hsd->hts"}> : () -> ()
    %cst_23 = arith.constant dense<0.000000e+00> : vector<4x8x8xf32>
    %60 = tpu.matmul %58, %59, %cst_23 {dimension_numbers = #tpu.dot_dimension_numbers<[2], [2], [1], [1], [0, 0, 0, 1, 1, 1], [0], [0]>} : vector<4x8x8xbf16>, vector<4x8x8xbf16>, vector<4x8x8xf32> -> vector<4x8x8xf32>
    "tpu.trace_stop"() : () -> ()
    %cst_24 = arith.constant 0.353553385 : f32
    %61 = vector.broadcast %cst_24 : f32 to vector<4x8x8xf32>
    %62 = arith.mulf %60, %61 : vector<4x8x8xf32>
    %63 = vector.shape_cast %9 : vector<8x8xf32> to vector<1x8x8xf32>
    %64 = vector.broadcast %63 : vector<1x8x8xf32> to vector<4x8x8xf32>
    %65 = arith.addf %62, %64 : vector<4x8x8xf32>
    %cst_25 = arith.constant dense<0xFF800000> : vector<4x8xf32>
    %66 = vector.multi_reduction <maximumf>, %65, %cst_25 [2] : vector<4x8x8xf32> to vector<4x8xf32>
    %67 = vector.shape_cast %66 : vector<4x8xf32> to vector<4x8x1xf32>
    %68 = vector.broadcast %67 : vector<4x8x1xf32> to vector<4x8x8xf32>
    %69 = arith.subf %65, %68 : vector<4x8x8xf32>
    %70 = math.exp %69 : vector<4x8x8xf32>
    %cst_26 = arith.constant dense<0.000000e+00> : vector<4x8xf32>
    %71 = vector.multi_reduction <add>, %70, %cst_26 [2] : vector<4x8x8xf32> to vector<4x8xf32>
    %72 = vector.shape_cast %71 : vector<4x8xf32> to vector<4x8x1xf32>
    %73 = tpu.reciprocal %72 {approx = true} : vector<4x8x1xf32> -> vector<4x8x1xf32>
    %74 = vector.broadcast %73 : vector<4x8x1xf32> to vector<4x8x8xf32>
    %75 = arith.mulf %70, %74 : vector<4x8x8xf32>
    %76 = arith.truncf %75 : vector<4x8x8xf32> to vector<4x8x8xbf16>
    %77 = arith.truncf %57 : vector<4x8x8xf32> to vector<4x8x8xbf16>
    "tpu.trace_start"() <{level = 10 : i32, message = "hts,hsd->htd"}> : () -> ()
    %cst_27 = arith.constant dense<0.000000e+00> : vector<4x8x8xf32>
    %78 = tpu.matmul %76, %77, %cst_27 {dimension_numbers = #tpu.dot_dimension_numbers<[2], [1], [1], [2], [0, 0, 0, 1, 1, 2], [0], [0]>} : vector<4x8x8xbf16>, vector<4x8x8xbf16>, vector<4x8x8xf32> -> vector<4x8x8xf32>
    "tpu.trace_stop"() : () -> ()
    %79 = vector.extract_strided_slice %78 {offsets = [0, 0, 0], sizes = [1, 8, 8], strides = [1, 1, 1]} : vector<4x8x8xf32> to vector<1x8x8xf32>
    %80 = vector.shape_cast %79 : vector<1x8x8xf32> to vector<8x8xf32>
    %81 = vector.extract_strided_slice %78 {offsets = [1, 0, 0], sizes = [1, 8, 8], strides = [1, 1, 1]} : vector<4x8x8xf32> to vector<1x8x8xf32>
    %82 = vector.shape_cast %81 : vector<1x8x8xf32> to vector<8x8xf32>
    %83 = vector.extract_strided_slice %78 {offsets = [2, 0, 0], sizes = [1, 8, 8], strides = [1, 1, 1]} : vector<4x8x8xf32> to vector<1x8x8xf32>
    %84 = vector.shape_cast %83 : vector<1x8x8xf32> to vector<8x8xf32>
    %85 = vector.extract_strided_slice %78 {offsets = [3, 0, 0], sizes = [1, 8, 8], strides = [1, 1, 1]} : vector<4x8x8xf32> to vector<1x8x8xf32>
    %86 = vector.shape_cast %85 : vector<1x8x8xf32> to vector<8x8xf32>
    %87 = tpu.concatenate %80, %82, %84, %86 in 1 : vector<8x8xf32>, vector<8x8xf32>, vector<8x8xf32>, vector<8x8xf32> -> vector<8x32xf32>
    %88 = arith.truncf %87 : vector<8x32xf32> to vector<8x32xbf16>
    %c0_28 = arith.constant 0 : index
    %c0_29 = arith.constant 0 : index
    %89 = vector.load %arg7[%c0_28, %c0_29] : memref<32x32xbf16, #tpu.memory_space<vmem>>, vector<32x32xbf16>
    %cst_30 = arith.constant dense<0.000000e+00> : vector<8x32xf32>
    %90 = tpu.matmul %88, %89, %cst_30 {dimension_numbers = #tpu.dot_dimension_numbers<[1], [0], [0], [1], [0, 0, 1, 1], [], []>} : vector<8x32xbf16>, vector<32x32xbf16>, vector<8x32xf32> -> vector<8x32xf32>
    %c0_31 = arith.constant 0 : index
    %c0_32 = arith.constant 0 : index
    %91 = vector.load %arg8[%c0_31, %c0_32] : memref<1x32xf32, #tpu.memory_space<vmem>>, vector<1x32xf32>
    %92 = vector.shape_cast %91 : vector<1x32xf32> to vector<32xf32>
    %93 = vector.shape_cast %92 : vector<32xf32> to vector<1x32xf32>
    %94 = vector.broadcast %93 : vector<1x32xf32> to vector<8x32xf32>
    %95 = arith.addf %90, %94 : vector<8x32xf32>
    %96 = arith.addf %1, %95 : vector<8x32xf32>
    %cst_33 = arith.constant dense<0.000000e+00> : vector<8xf32>
    %97 = vector.multi_reduction <add>, %96, %cst_33 [1] : vector<8x32xf32> to vector<8xf32>
    %98 = vector.shape_cast %97 : vector<8xf32> to vector<8x1xf32>
    %cst_34 = arith.constant 3.200000e+01 : f32
    %99 = vector.broadcast %cst_34 : f32 to vector<8x1xf32>
    %100 = arith.divf %98, %99 : vector<8x1xf32>
    %101 = vector.broadcast %100 : vector<8x1xf32> to vector<8x32xf32>
    %102 = arith.subf %96, %101 : vector<8x32xf32>
    %103 = arith.mulf %102, %102 : vector<8x32xf32>
    %cst_35 = arith.constant dense<0.000000e+00> : vector<8xf32>
    %104 = vector.multi_reduction <add>, %103, %cst_35 [1] : vector<8x32xf32> to vector<8xf32>
    %105 = vector.shape_cast %104 : vector<8xf32> to vector<8x1xf32>
    %cst_36 = arith.constant 3.200000e+01 : f32
    %106 = vector.broadcast %cst_36 : f32 to vector<8x1xf32>
    %107 = arith.divf %105, %106 : vector<8x1xf32>
    %108 = vector.broadcast %100 : vector<8x1xf32> to vector<8x32xf32>
    %109 = arith.subf %96, %108 : vector<8x32xf32>
    %cst_37 = arith.constant 9.99999997E-7 : f32
    %110 = vector.broadcast %cst_37 : f32 to vector<8x1xf32>
    %111 = arith.addf %107, %110 : vector<8x1xf32>
    %112 = math.rsqrt %111 : vector<8x1xf32>
    %113 = vector.broadcast %112 : vector<8x1xf32> to vector<8x32xf32>
    %114 = arith.mulf %109, %113 : vector<8x32xf32>
    %115 = vector.shape_cast %17 : vector<32xf32> to vector<1x32xf32>
    %116 = vector.broadcast %115 : vector<1x32xf32> to vector<8x32xf32>
    %117 = arith.mulf %114, %116 : vector<8x32xf32>
    %118 = vector.shape_cast %19 : vector<32xf32> to vector<1x32xf32>
    %119 = vector.broadcast %118 : vector<1x32xf32> to vector<8x32xf32>
    %120 = arith.addf %117, %119 : vector<8x32xf32>
    %121 = arith.truncf %120 : vector<8x32xf32> to vector<8x32xbf16>
    %c0_38 = arith.constant 0 : index
    %c0_39 = arith.constant 0 : index
    %122 = vector.load %arg9[%c0_38, %c0_39] : memref<32x32xbf16, #tpu.memory_space<vmem>>, vector<32x32xbf16>
    %cst_40 = arith.constant dense<0.000000e+00> : vector<8x32xf32>
    %123 = tpu.matmul %121, %122, %cst_40 {dimension_numbers = #tpu.dot_dimension_numbers<[1], [0], [0], [1], [0, 0, 1, 1], [], []>} : vector<8x32xbf16>, vector<32x32xbf16>, vector<8x32xf32> -> vector<8x32xf32>
    %c0_41 = arith.constant 0 : index
    %c0_42 = arith.constant 0 : index
    %124 = vector.load %arg10[%c0_41, %c0_42] : memref<1x32xf32, #tpu.memory_space<vmem>>, vector<1x32xf32>
    %125 = vector.shape_cast %124 : vector<1x32xf32> to vector<32xf32>
    %126 = vector.shape_cast %125 : vector<32xf32> to vector<1x32xf32>
    %127 = vector.broadcast %126 : vector<1x32xf32> to vector<8x32xf32>
    %128 = arith.addf %123, %127 : vector<8x32xf32>
    %129 = arith.truncf %3 : vector<8x32xf32> to vector<8x32xbf16>
    %c0_43 = arith.constant 0 : index
    %c0_44 = arith.constant 0 : index
    %130 = vector.load %arg11[%c0_43, %c0_44] : memref<32x64xbf16, #tpu.memory_space<vmem>>, vector<32x64xbf16>
    %cst_45 = arith.constant dense<0.000000e+00> : vector<8x64xf32>
    %131 = tpu.matmul %129, %130, %cst_45 {dimension_numbers = #tpu.dot_dimension_numbers<[1], [0], [0], [1], [0, 0, 1, 1], [], []>} : vector<8x32xbf16>, vector<32x64xbf16>, vector<8x64xf32> -> vector<8x64xf32>
    %c0_46 = arith.constant 0 : index
    %c0_47 = arith.constant 0 : index
    %132 = vector.load %arg12[%c0_46, %c0_47] : memref<1x64xf32, #tpu.memory_space<vmem>>, vector<1x64xf32>
    %133 = vector.shape_cast %132 : vector<1x64xf32> to vector<64xf32>
    %134 = vector.shape_cast %133 : vector<64xf32> to vector<1x64xf32>
    %135 = vector.broadcast %134 : vector<1x64xf32> to vector<8x64xf32>
    %136 = arith.addf %131, %135 : vector<8x64xf32>
    %137 = vector.extract_strided_slice %128 {offsets = [0, 0], sizes = [8, 8], strides = [1, 1]} : vector<8x32xf32> to vector<8x8xf32>
    %138 = vector.extract_strided_slice %128 {offsets = [0, 8], sizes = [8, 8], strides = [1, 1]} : vector<8x32xf32> to vector<8x8xf32>
    %139 = vector.extract_strided_slice %128 {offsets = [0, 16], sizes = [8, 8], strides = [1, 1]} : vector<8x32xf32> to vector<8x8xf32>
    %140 = vector.extract_strided_slice %128 {offsets = [0, 24], sizes = [8, 8], strides = [1, 1]} : vector<8x32xf32> to vector<8x8xf32>
    %141 = vector.shape_cast %137 : vector<8x8xf32> to vector<1x8x8xf32>
    %142 = vector.shape_cast %138 : vector<8x8xf32> to vector<1x8x8xf32>
    %143 = vector.shape_cast %139 : vector<8x8xf32> to vector<1x8x8xf32>
    %144 = vector.shape_cast %140 : vector<8x8xf32> to vector<1x8x8xf32>
    %145 = tpu.concatenate %141, %142, %143, %144 in 0 : vector<1x8x8xf32>, vector<1x8x8xf32>, vector<1x8x8xf32>, vector<1x8x8xf32> -> vector<4x8x8xf32>
    %146 = vector.extract_strided_slice %136 {offsets = [0, 0], sizes = [8, 32], strides = [1, 1]} : vector<8x64xf32> to vector<8x32xf32>
    %147 = vector.extract_strided_slice %146 {offsets = [0, 0], sizes = [8, 8], strides = [1, 1]} : vector<8x32xf32> to vector<8x8xf32>
    %148 = vector.extract_strided_slice %146 {offsets = [0, 8], sizes = [8, 8], strides = [1, 1]} : vector<8x32xf32> to vector<8x8xf32>
    %149 = vector.extract_strided_slice %146 {offsets = [0, 16], sizes = [8, 8], strides = [1, 1]} : vector<8x32xf32> to vector<8x8xf32>
    %150 = vector.extract_strided_slice %146 {offsets = [0, 24], sizes = [8, 8], strides = [1, 1]} : vector<8x32xf32> to vector<8x8xf32>
    %151 = vector.shape_cast %147 : vector<8x8xf32> to vector<1x8x8xf32>
    %152 = vector.shape_cast %148 : vector<8x8xf32> to vector<1x8x8xf32>
    %153 = vector.shape_cast %149 : vector<8x8xf32> to vector<1x8x8xf32>
    %154 = vector.shape_cast %150 : vector<8x8xf32> to vector<1x8x8xf32>
    %155 = tpu.concatenate %151, %152, %153, %154 in 0 : vector<1x8x8xf32>, vector<1x8x8xf32>, vector<1x8x8xf32>, vector<1x8x8xf32> -> vector<4x8x8xf32>
    %156 = vector.extract_strided_slice %136 {offsets = [0, 32], sizes = [8, 32], strides = [1, 1]} : vector<8x64xf32> to vector<8x32xf32>
    %157 = vector.extract_strided_slice %156 {offsets = [0, 0], sizes = [8, 8], strides = [1, 1]} : vector<8x32xf32> to vector<8x8xf32>
    %158 = vector.extract_strided_slice %156 {offsets = [0, 8], sizes = [8, 8], strides = [1, 1]} : vector<8x32xf32> to vector<8x8xf32>
    %159 = vector.extract_strided_slice %156 {offsets = [0, 16], sizes = [8, 8], strides = [1, 1]} : vector<8x32xf32> to vector<8x8xf32>
    %160 = vector.extract_strided_slice %156 {offsets = [0, 24], sizes = [8, 8], strides = [1, 1]} : vector<8x32xf32> to vector<8x8xf32>
    %161 = vector.shape_cast %157 : vector<8x8xf32> to vector<1x8x8xf32>
    %162 = vector.shape_cast %158 : vector<8x8xf32> to vector<1x8x8xf32>
    %163 = vector.shape_cast %159 : vector<8x8xf32> to vector<1x8x8xf32>
    %164 = vector.shape_cast %160 : vector<8x8xf32> to vector<1x8x8xf32>
    %165 = tpu.concatenate %161, %162, %163, %164 in 0 : vector<1x8x8xf32>, vector<1x8x8xf32>, vector<1x8x8xf32>, vector<1x8x8xf32> -> vector<4x8x8xf32>
    %166 = arith.truncf %145 : vector<4x8x8xf32> to vector<4x8x8xbf16>
    %167 = arith.truncf %155 : vector<4x8x8xf32> to vector<4x8x8xbf16>
    "tpu.trace_start"() <{level = 10 : i32, message = "htd,hsd->hts"}> : () -> ()
    %cst_48 = arith.constant dense<0.000000e+00> : vector<4x8x8xf32>
    %168 = tpu.matmul %166, %167, %cst_48 {dimension_numbers = #tpu.dot_dimension_numbers<[2], [2], [1], [1], [0, 0, 0, 1, 1, 1], [0], [0]>} : vector<4x8x8xbf16>, vector<4x8x8xbf16>, vector<4x8x8xf32> -> vector<4x8x8xf32>
    "tpu.trace_stop"() : () -> ()
    %cst_49 = arith.constant 0.353553385 : f32
    %169 = vector.broadcast %cst_49 : f32 to vector<4x8x8xf32>
    %170 = arith.mulf %168, %169 : vector<4x8x8xf32>
    %171 = vector.shape_cast %15 : vector<8x8xf32> to vector<1x8x8xf32>
    %172 = vector.broadcast %171 : vector<1x8x8xf32> to vector<4x8x8xf32>
    %173 = arith.addf %170, %172 : vector<4x8x8xf32>
    %cst_50 = arith.constant dense<0xFF800000> : vector<4x8xf32>
    %174 = vector.multi_reduction <maximumf>, %173, %cst_50 [2] : vector<4x8x8xf32> to vector<4x8xf32>
    %175 = vector.shape_cast %174 : vector<4x8xf32> to vector<4x8x1xf32>
    %176 = vector.broadcast %175 : vector<4x8x1xf32> to vector<4x8x8xf32>
    %177 = arith.subf %173, %176 : vector<4x8x8xf32>
    %178 = math.exp %177 : vector<4x8x8xf32>
    %cst_51 = arith.constant dense<0.000000e+00> : vector<4x8xf32>
    %179 = vector.multi_reduction <add>, %178, %cst_51 [2] : vector<4x8x8xf32> to vector<4x8xf32>
    %180 = vector.shape_cast %179 : vector<4x8xf32> to vector<4x8x1xf32>
    %181 = tpu.reciprocal %180 {approx = true} : vector<4x8x1xf32> -> vector<4x8x1xf32>
    %182 = vector.broadcast %181 : vector<4x8x1xf32> to vector<4x8x8xf32>
    %183 = arith.mulf %178, %182 : vector<4x8x8xf32>
    %184 = arith.truncf %183 : vector<4x8x8xf32> to vector<4x8x8xbf16>
    %185 = arith.truncf %165 : vector<4x8x8xf32> to vector<4x8x8xbf16>
    "tpu.trace_start"() <{level = 10 : i32, message = "hts,hsd->htd"}> : () -> ()
    %cst_52 = arith.constant dense<0.000000e+00> : vector<4x8x8xf32>
    %186 = tpu.matmul %184, %185, %cst_52 {dimension_numbers = #tpu.dot_dimension_numbers<[2], [1], [1], [2], [0, 0, 0, 1, 1, 2], [0], [0]>} : vector<4x8x8xbf16>, vector<4x8x8xbf16>, vector<4x8x8xf32> -> vector<4x8x8xf32>
    "tpu.trace_stop"() : () -> ()
    %c0_53 = arith.constant 0 : index
    %c0_54 = arith.constant 0 : index
    %c0_55 = arith.constant 0 : index
    %c0_56 = arith.constant 0 : index
    %187 = vector.load %arg22[%c0_53, %c0_54, %c0_55, %c0_56] : memref<1x4x8x8xf32, #tpu.memory_space<vmem>>, vector<1x4x8x8xf32>
    %188 = vector.shape_cast %187 : vector<1x4x8x8xf32> to vector<4x8x8xf32>
    %189 = vector.shape_cast %183 : vector<4x8x8xf32> to vector<1x4x8x8xf32>
    tpu.vector_store %arg22[%c0_53, %c0_54, %c0_55, %c0_56], %189 {strides = array<i32>} : memref<1x4x8x8xf32, #tpu.memory_space<vmem>>, vector<1x4x8x8xf32>,
    %190 = vector.extract_strided_slice %186 {offsets = [0, 0, 0], sizes = [1, 8, 8], strides = [1, 1, 1]} : vector<4x8x8xf32> to vector<1x8x8xf32>
    %191 = vector.shape_cast %190 : vector<1x8x8xf32> to vector<8x8xf32>
    %192 = vector.extract_strided_slice %186 {offsets = [1, 0, 0], sizes = [1, 8, 8], strides = [1, 1, 1]} : vector<4x8x8xf32> to vector<1x8x8xf32>
    %193 = vector.shape_cast %192 : vector<1x8x8xf32> to vector<8x8xf32>
    %194 = vector.extract_strided_slice %186 {offsets = [2, 0, 0], sizes = [1, 8, 8], strides = [1, 1, 1]} : vector<4x8x8xf32> to vector<1x8x8xf32>
    %195 = vector.shape_cast %194 : vector<1x8x8xf32> to vector<8x8xf32>
    %196 = vector.extract_strided_slice %186 {offsets = [3, 0, 0], sizes = [1, 8, 8], strides = [1, 1, 1]} : vector<4x8x8xf32> to vector<1x8x8xf32>
    %197 = vector.shape_cast %196 : vector<1x8x8xf32> to vector<8x8xf32>
    %198 = tpu.concatenate %191, %193, %195, %197 in 1 : vector<8x8xf32>, vector<8x8xf32>, vector<8x8xf32>, vector<8x8xf32> -> vector<8x32xf32>
    %199 = arith.truncf %198 : vector<8x32xf32> to vector<8x32xbf16>
    %c0_57 = arith.constant 0 : index
    %c0_58 = arith.constant 0 : index
    %200 = vector.load %arg13[%c0_57, %c0_58] : memref<32x32xbf16, #tpu.memory_space<vmem>>, vector<32x32xbf16>
    %cst_59 = arith.constant dense<0.000000e+00> : vector<8x32xf32>
    %201 = tpu.matmul %199, %200, %cst_59 {dimension_numbers = #tpu.dot_dimension_numbers<[1], [0], [0], [1], [0, 0, 1, 1], [], []>} : vector<8x32xbf16>, vector<32x32xbf16>, vector<8x32xf32> -> vector<8x32xf32>
    %c0_60 = arith.constant 0 : index
    %c0_61 = arith.constant 0 : index
    %202 = vector.load %arg14[%c0_60, %c0_61] : memref<1x32xf32, #tpu.memory_space<vmem>>, vector<1x32xf32>
    %203 = vector.shape_cast %202 : vector<1x32xf32> to vector<32xf32>
    %204 = vector.shape_cast %203 : vector<32xf32> to vector<1x32xf32>
    %205 = vector.broadcast %204 : vector<1x32xf32> to vector<8x32xf32>
    %206 = arith.addf %201, %205 : vector<8x32xf32>
    %207 = arith.addf %96, %206 : vector<8x32xf32>
    %cst_62 = arith.constant dense<0.000000e+00> : vector<8xf32>
    %208 = vector.multi_reduction <add>, %207, %cst_62 [1] : vector<8x32xf32> to vector<8xf32>
    %209 = vector.shape_cast %208 : vector<8xf32> to vector<8x1xf32>
    %cst_63 = arith.constant 3.200000e+01 : f32
    %210 = vector.broadcast %cst_63 : f32 to vector<8x1xf32>
    %211 = arith.divf %209, %210 : vector<8x1xf32>
    %212 = vector.broadcast %211 : vector<8x1xf32> to vector<8x32xf32>
    %213 = arith.subf %207, %212 : vector<8x32xf32>
    %214 = arith.mulf %213, %213 : vector<8x32xf32>
    %cst_64 = arith.constant dense<0.000000e+00> : vector<8xf32>
    %215 = vector.multi_reduction <add>, %214, %cst_64 [1] : vector<8x32xf32> to vector<8xf32>
    %216 = vector.shape_cast %215 : vector<8xf32> to vector<8x1xf32>
    %cst_65 = arith.constant 3.200000e+01 : f32
    %217 = vector.broadcast %cst_65 : f32 to vector<8x1xf32>
    %218 = arith.divf %216, %217 : vector<8x1xf32>
    %219 = vector.broadcast %211 : vector<8x1xf32> to vector<8x32xf32>
    %220 = arith.subf %207, %219 : vector<8x32xf32>
    %cst_66 = arith.constant 9.99999997E-7 : f32
    %221 = vector.broadcast %cst_66 : f32 to vector<8x1xf32>
    %222 = arith.addf %218, %221 : vector<8x1xf32>
    %223 = math.rsqrt %222 : vector<8x1xf32>
    %224 = vector.broadcast %223 : vector<8x1xf32> to vector<8x32xf32>
    %225 = arith.mulf %220, %224 : vector<8x32xf32>
    %226 = vector.shape_cast %17 : vector<32xf32> to vector<1x32xf32>
    %227 = vector.broadcast %226 : vector<1x32xf32> to vector<8x32xf32>
    %228 = arith.mulf %225, %227 : vector<8x32xf32>
    %229 = vector.shape_cast %19 : vector<32xf32> to vector<1x32xf32>
    %230 = vector.broadcast %229 : vector<1x32xf32> to vector<8x32xf32>
    %231 = arith.addf %228, %230 : vector<8x32xf32>
    %232 = arith.truncf %231 : vector<8x32xf32> to vector<8x32xbf16>
    %c0_67 = arith.constant 0 : index
    %c0_68 = arith.constant 0 : index
    %233 = vector.load %arg15[%c0_67, %c0_68] : memref<32x64xbf16, #tpu.memory_space<vmem>>, vector<32x64xbf16>
    %cst_69 = arith.constant dense<0.000000e+00> : vector<8x64xf32>
    %234 = tpu.matmul %232, %233, %cst_69 {dimension_numbers = #tpu.dot_dimension_numbers<[1], [0], [0], [1], [0, 0, 1, 1], [], []>} : vector<8x32xbf16>, vector<32x64xbf16>, vector<8x64xf32> -> vector<8x64xf32>
    %c0_70 = arith.constant 0 : index
    %c0_71 = arith.constant 0 : index
    %235 = vector.load %arg16[%c0_70, %c0_71] : memref<1x64xf32, #tpu.memory_space<vmem>>, vector<1x64xf32>
    %236 = vector.shape_cast %235 : vector<1x64xf32> to vector<64xf32>
    %237 = vector.shape_cast %236 : vector<64xf32> to vector<1x64xf32>
    %238 = vector.broadcast %237 : vector<1x64xf32> to vector<8x64xf32>
    %239 = arith.addf %234, %238 : vector<8x64xf32>
    %cst_72 = arith.constant 0.000000e+00 : f32
    %240 = vector.broadcast %cst_72 : f32 to vector<8x64xf32>
    %241 = arith.maximumf %239, %240 : vector<8x64xf32>
    %242 = arith.truncf %241 : vector<8x64xf32> to vector<8x64xbf16>
    %c0_73 = arith.constant 0 : index
    %c0_74 = arith.constant 0 : index
    %243 = vector.load %arg17[%c0_73, %c0_74] : memref<64x32xbf16, #tpu.memory_space<vmem>>, vector<64x32xbf16>
    %cst_75 = arith.constant dense<0.000000e+00> : vector<8x32xf32>
    %244 = tpu.matmul %242, %243, %cst_75 {dimension_numbers = #tpu.dot_dimension_numbers<[1], [0], [0], [1], [0, 0, 1, 1], [], []>} : vector<8x64xbf16>, vector<64x32xbf16>, vector<8x32xf32> -> vector<8x32xf32>
    %c0_76 = arith.constant 0 : index
    %c0_77 = arith.constant 0 : index
    %245 = vector.load %arg18[%c0_76, %c0_77] : memref<1x32xf32, #tpu.memory_space<vmem>>, vector<1x32xf32>
    %246 = vector.shape_cast %245 : vector<1x32xf32> to vector<32xf32>
    %247 = vector.shape_cast %246 : vector<32xf32> to vector<1x32xf32>
    %248 = vector.broadcast %247 : vector<1x32xf32> to vector<8x32xf32>
    %249 = arith.addf %244, %248 : vector<8x32xf32>
    %250 = arith.addf %207, %249 : vector<8x32xf32>
    %cst_78 = arith.constant dense<0.000000e+00> : vector<8xf32>
    %251 = vector.multi_reduction <add>, %250, %cst_78 [1] : vector<8x32xf32> to vector<8xf32>
    %252 = vector.shape_cast %251 : vector<8xf32> to vector<8x1xf32>
    %cst_79 = arith.constant 3.200000e+01 : f32
    %253 = vector.broadcast %cst_79 : f32 to vector<8x1xf32>
    %254 = arith.divf %252, %253 : vector<8x1xf32>
    %255 = vector.broadcast %254 : vector<8x1xf32> to vector<8x32xf32>
    %256 = arith.subf %250, %255 : vector<8x32xf32>
    %257 = arith.mulf %256, %256 : vector<8x32xf32>
    %cst_80 = arith.constant dense<0.000000e+00> : vector<8xf32>
    %258 = vector.multi_reduction <add>, %257, %cst_80 [1] : vector<8x32xf32> to vector<8xf32>
    %259 = vector.shape_cast %258 : vector<8xf32> to vector<8x1xf32>
    %cst_81 = arith.constant 3.200000e+01 : f32
    %260 = vector.broadcast %cst_81 : f32 to vector<8x1xf32>
    %261 = arith.divf %259, %260 : vector<8x1xf32>
    %262 = vector.broadcast %254 : vector<8x1xf32> to vector<8x32xf32>
    %263 = arith.subf %250, %262 : vector<8x32xf32>
    %cst_82 = arith.constant 9.99999997E-7 : f32
    %264 = vector.broadcast %cst_82 : f32 to vector<8x1xf32>
    %265 = arith.addf %261, %264 : vector<8x1xf32>
    %266 = math.rsqrt %265 : vector<8x1xf32>
    %267 = vector.broadcast %266 : vector<8x1xf32> to vector<8x32xf32>
    %268 = arith.mulf %263, %267 : vector<8x32xf32>
    %269 = vector.shape_cast %17 : vector<32xf32> to vector<1x32xf32>
    %270 = vector.broadcast %269 : vector<1x32xf32> to vector<8x32xf32>
    %271 = arith.mulf %268, %270 : vector<8x32xf32>
    %272 = vector.shape_cast %19 : vector<32xf32> to vector<1x32xf32>
    %273 = vector.broadcast %272 : vector<1x32xf32> to vector<8x32xf32>
    %274 = arith.addf %271, %273 : vector<8x32xf32>
    %c0_83 = arith.constant 0 : index
    %c0_84 = arith.constant 0 : index
    %c0_85 = arith.constant 0 : index
    %275 = vector.load %arg21[%c0_83, %c0_84, %c0_85] : memref<1x8x32xf32, #tpu.memory_space<vmem>>, vector<1x8x32xf32>
    %276 = vector.shape_cast %275 : vector<1x8x32xf32> to vector<8x32xf32>
    %277 = vector.shape_cast %274 : vector<8x32xf32> to vector<1x8x32xf32>
    tpu.vector_store %arg21[%c0_83, %c0_84, %c0_85], %277 {strides = array<i32>} : memref<1x8x32xf32, #tpu.memory_space<vmem>>, vector<1x8x32xf32>,
    return
  }
  func.func @transform_0(%arg0: i32) -> (i32, i32, i32) {
    %c0_i32 = arith.constant 0 : i32
    %c0_i32_0 = arith.constant 0 : i32
    %c0_i32_1 = arith.constant 0 : i32
    return %arg0, %c0_i32, %c0_i32_0 : i32, i32, i32
  }
  func.func @transform_1(%arg0: i32) -> (i32, i32, i32) {
    %c0_i32 = arith.constant 0 : i32
    %c0_i32_0 = arith.constant 0 : i32
    %c0_i32_1 = arith.constant 0 : i32
    return %arg0, %c0_i32, %c0_i32_0 : i32, i32, i32
  }
  func.func @transform_2(%arg0: i32) -> (i32, i32, i32) {
    %c0_i32 = arith.constant 0 : i32
    %c0_i32_0 = arith.constant 0 : i32
    %c0_i32_1 = arith.constant 0 : i32
    return %arg0, %c0_i32, %c0_i32_0 : i32, i32, i32
  }
  func.func @transform_3(%arg0: i32) -> (i32, i32, i32) {
    %c0_i32 = arith.constant 0 : i32
    %c0_i32_0 = arith.constant 0 : i32
    %c0_i32_1 = arith.constant 0 : i32
    return %arg0, %c0_i32, %c0_i32_0 : i32, i32, i32
  }
  func.func @transform_4(%arg0: i32) -> (i32, i32) {
    %c0_i32 = arith.constant 0 : i32
    %c0_i32_0 = arith.constant 0 : i32
    %c0_i32_1 = arith.constant 0 : i32
    return %c0_i32, %c0_i32_0 : i32, i32
  }
  func.func @transform_5(%arg0: i32) -> (i32, i32) {
    %c0_i32 = arith.constant 0 : i32
    %c0_i32_0 = arith.constant 0 : i32
    %c0_i32_1 = arith.constant 0 : i32
    return %c0_i32, %c0_i32_0 : i32, i32
  }
  func.func @transform_6(%arg0: i32) -> (i32, i32) {
    %c0_i32 = arith.constant 0 : i32
    %c0_i32_0 = arith.constant 0 : i32
    %c0_i32_1 = arith.constant 0 : i32
    return %c0_i32, %c0_i32_0 : i32, i32
  }
  func.func @transform_7(%arg0: i32) -> (i32, i32) {
    %c0_i32 = arith.constant 0 : i32
    %c0_i32_0 = arith.constant 0 : i32
    %c0_i32_1 = arith.constant 0 : i32
    return %c0_i32, %c0_i32_0 : i32, i32
  }
  func.func @transform_8(%arg0: i32) -> (i32, i32) {
    %c0_i32 = arith.constant 0 : i32
    %c0_i32_0 = arith.constant 0 : i32
    %c0_i32_1 = arith.constant 0 : i32
    return %c0_i32, %c0_i32_0 : i32, i32
  }
  func.func @transform_9(%arg0: i32) -> (i32, i32) {
    %c0_i32 = arith.constant 0 : i32
    %c0_i32_0 = arith.constant 0 : i32
    %c0_i32_1 = arith.constant 0 : i32
    return %c0_i32, %c0_i32_0 : i32, i32
  }
  func.func @transform_10(%arg0: i32) -> (i32, i32) {
    %c0_i32 = arith.constant 0 : i32
    %c0_i32_0 = arith.constant 0 : i32
    %c0_i32_1 = arith.constant 0 : i32
    return %c0_i32, %c0_i32_0 : i32, i32
  }
  func.func @transform_11(%arg0: i32) -> (i32, i32) {
    %c0_i32 = arith.constant 0 : i32
    %c0_i32_0 = arith.constant 0 : i32
    %c0_i32_1 = arith.constant 0 : i32
    return %c0_i32, %c0_i32_0 : i32, i32
  }
  func.func @transform_12(%arg0: i32) -> (i32, i32) {
    %c0_i32 = arith.constant 0 : i32
    %c0_i32_0 = arith.constant 0 : i32
    %c0_i32_1 = arith.constant 0 : i32
    return %c0_i32, %c0_i32_0 : i32, i32
  }
  func.func @transform_13(%arg0: i32) -> (i32, i32) {
    %c0_i32 = arith.constant 0 : i32
    %c0_i32_0 = arith.constant 0 : i32
    %c0_i32_1 = arith.constant 0 : i32
    return %c0_i32, %c0_i32_0 : i32, i32
  }
  func.func @transform_14(%arg0: i32) -> (i32, i32) {
    %c0_i32 = arith.constant 0 : i32
    %c0_i32_0 = arith.constant 0 : i32
    %c0_i32_1 = arith.constant 0 : i32
    return %c0_i32, %c0_i32_0 : i32, i32
  }
  func.func @transform_15(%arg0: i32) -> (i32, i32) {
    %c0_i32 = arith.constant 0 : i32
    %c0_i32_0 = arith.constant 0 : i32
    %c0_i32_1 = arith.constant 0 : i32
    return %c0_i32, %c0_i32_0 : i32, i32
  }
  func.func @transform_16(%arg0: i32) -> (i32, i32) {
    %c0_i32 = arith.constant 0 : i32
    %c0_i32_0 = arith.constant 0 : i32
    %c0_i32_1 = arith.constant 0 : i32
    return %c0_i32, %c0_i32_0 : i32, i32
  }
  func.func @transform_17(%arg0: i32) -> (i32, i32) {
    %c0_i32 = arith.constant 0 : i32
    %c0_i32_0 = arith.constant 0 : i32
    %c0_i32_1 = arith.constant 0 : i32
    return %c0_i32, %c0_i32_0 : i32, i32
  }
  func.func @transform_18(%arg0: i32) -> (i32, i32) {
    %c0_i32 = arith.constant 0 : i32
    %c0_i32_0 = arith.constant 0 : i32
    %c0_i32_1 = arith.constant 0 : i32
    return %c0_i32, %c0_i32_0 : i32, i32
  }
  func.func @transform_19(%arg0: i32) -> (i32, i32) {
    %c0_i32 = arith.constant 0 : i32
    %c0_i32_0 = arith.constant 0 : i32
    %c0_i32_1 = arith.constant 0 : i32
    return %c0_i32, %c0_i32_0 : i32, i32
  }
  func.func @transform_20(%arg0: i32) -> (i32, i32, i32) {
    %c0_i32 = arith.constant 0 : i32
    %c0_i32_0 = arith.constant 0 : i32
    %c0_i32_1 = arith.constant 0 : i32
    return %arg0, %c0_i32, %c0_i32_0 : i32, i32, i32
  }
  func.func @transform_21(%arg0: i32) -> (i32, i32, i32, i32) {
    %c0_i32 = arith.constant 0 : i32
    %c0_i32_0 = arith.constant 0 : i32
    %c0_i32_1 = arith.constant 0 : i32
    %c0_i32_2 = arith.constant 0 : i32
    return %arg0, %c0_i32, %c0_i32_0, %c0_i32_1 : i32, i32, i32, i32
  }
}

</mosaic_0001>

<bundles_post_ra>
// kernel: tpu_custom_call.1
= control target key start
LH: loop header
LB: loop body
LE: loop exit
PB: predicated region body
PF: predicated region fallthrough
CT: control target
= control target key end

     0   :  { %s4321_s0 = inlined_call_operand.vmem [shape: f32[2,8,32], index: 0, kind: input, shape index: {}]   ;;  %s4322_s1 = inlined_call_operand.vmem [shape: f32[2,8,32], index: 1, kind: input, shape index: {}]   ;;  %s4323_s2 = inlined_call_operand.vmem [shape: f32[2,8,8], index: 2, kind: input, shape index: {}]   ;;  %s4324_s3 = inlined_call_operand.hbm [shape: f32[2,8,8], index: 3, kind: input, shape index: {}]   ;;  %s4325_s4 = inlined_call_operand.hbm [shape: bf16[32,96], index: 4, kind: input, shape index: {}]   ;;  %s4326_s5 = inlined_call_operand.vmem [shape: f32[1,96], index: 5, kind: input, shape index: {}]   ;;  %s4327_s6 = inlined_call_operand.hbm [shape: bf16[32,32], index: 6, kind: input, shape index: {}]   ;;  %s4328_s7 = inlined_call_operand.hbm [shape: f32[1,32], index: 7, kind: input, shape index: {}]   ;;  %s4329_s8 = inlined_call_operand.hbm [shape: bf16[32,32], index: 8, kind: input, shape index: {}]   ;;  %s4330_s9 = inlined_call_operand.hbm [shape: f32[1,32], index: 9, kind: input, shape index: {}]   ;;  %s4331_s10 = inlined_call_operand.vmem [shape: bf16[32,64], index: 10, kind: input, shape index: {}]   ;;  %s4332_s11 = inlined_call_operand.hbm [shape: f32[1,64], index: 11, kind: input, shape index: {}]   ;;  %s4333_s12 = inlined_call_operand.hbm [shape: bf16[32,32], index: 12, kind: input, shape index: {}]   ;;  %s4334_s13 = inlined_call_operand.hbm [shape: f32[1,32], index: 13, kind: input, shape index: {}]   ;;  %s4335_s14 = inlined_call_operand.vmem [shape: bf16[32,64], index: 14, kind: input, shape index: {}]   ;;  %s4336_s15 = inlined_call_operand.vmem [shape: f32[1,64], index: 15, kind: input, shape index: {}]   ;;  %s4337_s16 = inlined_call_operand.vmem [shape: bf16[64,32], index: 16, kind: input, shape index: {}]   ;;  %s4338_s17 = inlined_call_operand.vmem [shape: f32[1,32], index: 17, kind: input, shape index: {}]   ;;  %s4339_s18 = inlined_call_operand.vmem [shape: f32[1,32], index: 18, kind: input, shape index: {}]   ;;  %s4340_s19 = inlined_call_operand.vmem [shape: f32[1,32], index: 19, kind: input, shape index: {}]   ;;  %s4341_s20 = inlined_call_operand.hbm [shape: f32[2,8,32], index: 20, kind: output, shape index: {0}]   ;;  %s4342_s21 = inlined_call_operand.hbm [shape: f32[2,4,8,8], index: 21, kind: output, shape index: {1}]  }
   0x1   :  { %4364 = sst [smem:[#allocation27_spill]] %s4321_s0 }
   0x2   :  { %4365 = sst [smem:[#allocation28_spill]] %s4322_s1 }
   0x3   :  { %4366 = sst [smem:[#allocation29_spill]] %s4323_s2 }
   0x4   :  { %4367 = sst [smem:[#allocation30_spill]] %s4324_s3 }
   0x5   :  { %4368 = sst [smem:[#allocation31_spill]] %s4325_s4 }
   0x6   :  { %4369 = sst [smem:[#allocation32_spill]] %s4326_s5 }
   0x7   :  { %4370 = sst [smem:[#allocation33_spill]] %s4327_s6 }
   0x8   :  { %4371 = sst [smem:[#allocation34_spill]] %s4328_s7 }
   0x9   :  { %4372 = sst [smem:[#allocation35_spill]] %s4335_s14 }
   0xa   :  { %4373 = sst [smem:[#allocation36_spill]] %s4336_s15 }
   0xb   :  { %4374 = sst [smem:[#allocation37_spill]] %s4337_s16 }
   0xc   :  { %4375 = sst [smem:[#allocation38_spill]] %s4338_s17 }
   0xd   :  { %4376 = sst [smem:[#allocation39_spill]] %s4339_s18 }
   0xe   :  { %4377 = sst [smem:[#allocation40_spill]] %s4340_s19 }
   0xf   :  { %4378 = sst [smem:[#allocation41_spill]] %s4341_s20 }
  0x10   :  { %4379 = sst [smem:[#allocation42_spill]] %s4342_s21 }
  0x11   :  { %27 = vsyncpa [#allocation3], 0 }
  0x12   :  { %29 = vsyncpa [#allocation3 + $0x1], 0 }
  0x13   :  { %30 = vsyncpa [#allocation6], 0 }
  0x14   :  { %31 = vsyncpa [#allocation9], 0 }
  0x15   :  { %32 = vsyncpa [#allocation12], 0 }
  0x16   :  { %33 = vsyncpa [#allocation15], 0 }
  0x17   :  { %34 = vsyncpa [#allocation4], 0 }
  0x18   :  { %36 = vsyncpa [#allocation4 + $0x1], 0 }
  0x19   :  { %37 = vsyncpa [#allocation19], 0 }
  0x1a   :  { %39 = vsyncpa [#allocation19 + $0x1], 0  ;;  %s3612_s2 = smov 0   ;;  %s3614_s25 = smov 0  }
  0x1b   :  { %s3616_s26 = smov 0   ;;  %s3618_s27 = smov 0  }
  0x1c LB: > { %s3478_s3 = smov [#allocation5]   ;;  %s3633_s29 = sadd.s32 4294967295, %s3476_s27   ;;  %s3476_s27 = sphi %s3618_s27, %s4427_s27   ;;  %s3472_s26 = sphi %s3616_s26, %s4426_s26   ;;  %s3468_s25 = sphi %s3614_s25, %s4425_s25   ;;  %s3464_s2 = sphi %s3612_s2, %s4424_s2  }
  0x1d   : > { %s554_s28 = sshll.u32 %s3478_s3, 4  ;;  %p2613_p0 = scmp.ge.s32.totalorder %s3476_s27, 1  ;;  %s3638_s28 = int_to_ptr.vmem [resolvable:$true] %s554_s28 }
  0x1e   : > { %p4351_p1 = scmp.eq.s32.totalorder %s3633_s29, 0  ;;  %p542_p2 = scmp.lt.s32.totalorder %s3476_s27, 3 }
  0x1f   : > { %s3479_s4 = smov [#allocation8]   ;;  %s3480_s22 = smov [#allocation11]  }
  0x20   : > { %p3640_p3 = pnand %p2613_p0, %p542_p2  ;;  %s584_s30 = sshll.u32 %s3479_s4, 4  ;;  %s3653_s30 = int_to_ptr.vmem [resolvable:$true] %s584_s30 }
  0x21   : > { %s608_s23 = sshll.u32 %s3480_s22, 4  ;;  %s4382_s3 = sld [smem:[#allocation31_spill]]  ;;  %s3655_s23 = int_to_ptr.vmem [resolvable:$true] %s608_s23 }
  0x22   : > { %s4380_s0 = scalar_select %p3640_p3, 1, 0 }
  0x23   : > { %p2947_p5 = pneg %p3640_p3 }
  0x25   : > { %p3649_p6 = pnand %p2947_p5, %p4351_p1 }
  0x27   : > { %s3108_s20 = scalar_lea.hbm %s4382_s3, 256  ;;  %p3665_p8 = pneg %p3649_p6 }
  0x28   : > { %p3109_p7 = scmp.ne.s32.totalorder %s4382_s3, %s3108_s20  ;;  %p3115_p11 = scmp.lt.u32.totalorder %s3108_s20, %s4382_s3 }
  0x2a   : > { %p3111_p9 = pnand %p3665_p8, %p3109_p7 }
  0x2c   : > { %p3112_p10 = pneg %p3111_p9 }
  0x2e   : > { %p3117_p12 = pnand %p3115_p11, %p3112_p10 }
  0x30   : > { %3120 = shalt.err (!%p3117_p12)
}
  0x31   : > { %s3121_s17 = scalar_lea.vmem %s3638_s28, 256  ;;  %p3129_p5 = scmp.lt.s32.totalorder %s3638_s28, %s3638_s28 }
  0x32   : > { %p3122_p13 = scmp.ne.s32.totalorder %s3638_s28, %s3121_s17  ;;  %p3130_p4 = scmp.lt.s32.totalorder %s3121_s17, %s3121_s17 }
  0x34   : > { %p3124_p0 = pnand %p3122_p13, %p3665_p8  ;;  %p3131_p7 = por %p3130_p4, %p3129_p5 }
  0x36   : > { %p3125_p2 = pneg %p3124_p0 }
  0x38   : > { %p3132_p9 = pnand %p3131_p7, %p3125_p2 }
  0x3a   : > { %3135 = shalt.err (!%p3132_p9)
}
  0x3b   : > { %s4349_s21 = smov 64   ;;  %s3482_s15 = smov 4  }
  0x3c   : > { %2950 = dma.hbm_to_vmem [thread:$0]  (!%p3649_p6), %s4382_s3, 256, %s3638_s28, [#allocation6], %s4349_s21, %s4349_s21, %s3482_s15  }
  0x3d   : > { %s4384_s7 = sld [smem:[#allocation34_spill]] }
  0x43   : > { %s3136_s17 = scalar_lea.hbm %s4384_s7, 16 }
  0x44   : > { %p3137_p4 = scmp.ne.s32.totalorder %s4384_s7, %s3136_s17  ;;  %p3143_p12 = scmp.lt.u32.totalorder %s3136_s17, %s4384_s7 }
  0x46   : > { %p3139_p10 = pnand %p3137_p4, %p3665_p8 }
  0x48   : > { %p3140_p11 = pneg %p3139_p10 }
  0x4a   : > { %p3145_p13 = pnand %p3143_p12, %p3140_p11 }
  0x4c   : > { %3148 = shalt.err (!%p3145_p13)
}
  0x4d   : > { %s3149_s28 = scalar_lea.vmem %s3653_s30, 16  ;;  %s3156_s14 = scalar_lea.vmem %s3653_s30, 32 }
  0x4e   : > { %p3150_p0 = scmp.ne.s32.totalorder %s3653_s30, %s3149_s28  ;;  %p3157_p7 = scmp.lt.s32.totalorder %s3653_s30, %s3653_s30 }
  0x4f   : > { %p3158_p9 = scmp.lt.s32.totalorder %s3156_s14, %s3149_s28 }
  0x50   : > { %p3152_p2 = pnand %p3150_p0, %p3665_p8 }
  0x51   : > { %p3159_p4 = por %p3158_p9, %p3157_p7 }
  0x52   : > { %p3153_p5 = pneg %p3152_p2 }
  0x54   : > { %p3160_p10 = pnand %p3159_p4, %p3153_p5 }
  0x56   : > { %3163 = shalt.err (!%p3160_p10)
}
  0x57   : > { %2956 = dma.hbm_to_vmem [thread:$0]  (!%p3649_p6), %s4384_s7, 16, %s3653_s30, [#allocation9]  }
  0x58   : > { %s3164_s1 = scalar_lea.hbm %s4330_s9, 16 }
  0x59   : > { %p3165_p11 = scmp.ne.s32.totalorder %s4330_s9, %s3164_s1  ;;  %p3171_p0 = scmp.lt.u32.totalorder %s3164_s1, %s4330_s9 }
  0x5b   : > { %p3167_p12 = pnand %p3165_p11, %p3665_p8 }
  0x5d   : > { %p3168_p13 = pneg %p3167_p12 }
  0x5f   : > { %p3173_p2 = pnand %p3171_p0, %p3168_p13 }
  0x61   : > { %3176 = shalt.err (!%p3173_p2)
}
  0x62   : > { %s3177_s30 = scalar_lea.vmem %s3655_s23, 16  ;;  %s3184_s14 = scalar_lea.vmem %s3655_s23, 32 }
  0x63   : > { %p3178_p5 = scmp.ne.s32.totalorder %s3655_s23, %s3177_s30  ;;  %p3185_p4 = scmp.lt.s32.totalorder %s3655_s23, %s3655_s23 }
  0x64   : > { %p3186_p10 = scmp.lt.s32.totalorder %s3184_s14, %s3177_s30 }
  0x65   : > { %p3180_p7 = pnand %p3178_p5, %p3665_p8 }
  0x66   : > { %p3187_p11 = por %p3186_p10, %p3185_p4 }
  0x67   : > { %p3181_p9 = pneg %p3180_p7 }
  0x69   : > { %p3188_p12 = pnand %p3187_p11, %p3181_p9 }
  0x6b   : > { %3191 = shalt.err (!%p3188_p12)
}
  0x6c   : > { %2962 = dma.hbm_to_vmem [thread:$0]  (!%p3649_p6), %s4330_s9, 16, %s3655_s23, [#allocation12]  }
  0x6d   : > { %s3483_s19 = smov [#allocation14]   ;;  %s3484_s1 = smov [#allocation7]  }
  0x6e   : > { %s632_s20 = sshll.u32 %s3483_s19, 4  ;;  %s570_s24 = sshll.u32 %s3484_s1, 4  ;;  %s633_s20 = int_to_ptr.vmem [resolvable:$true] %s632_s20  ;;  %s571_s24 = int_to_ptr.vmem [resolvable:$true] %s570_s24 }
  0x6f   : > { %s3192_s28 = scalar_lea.hbm %s4333_s12, 256 }
  0x70   : > { %p3193_p13 = scmp.ne.s32.totalorder %s4333_s12, %s3192_s28  ;;  %p3199_p5 = scmp.lt.u32.totalorder %s3192_s28, %s4333_s12 }
  0x72   : > { %p3195_p0 = pnand %p3193_p13, %p3665_p8 }
  0x74   : > { %p3196_p2 = pneg %p3195_p0 }
  0x76   : > { %p3201_p7 = pnand %p3199_p5, %p3196_p2 }
  0x78   : > { %3204 = shalt.err (!%p3201_p7)
}
  0x79   : > { %s3205_s23 = scalar_lea.vmem %s633_s20, 256  ;;  %p3213_p11 = scmp.lt.s32.totalorder %s633_s20, %s633_s20 }
  0x7a   : > { %p3206_p9 = scmp.ne.s32.totalorder %s633_s20, %s3205_s23  ;;  %p3214_p12 = scmp.lt.s32.totalorder %s3205_s23, %s3205_s23 }
  0x7c   : > { %p3208_p4 = pnand %p3206_p9, %p3665_p8  ;;  %p3215_p1 = por %p3214_p12, %p3213_p11 }
  0x7e   : > { %p3209_p10 = pneg %p3208_p4 }
  0x80   : > { %p3216_p3 = pnand %p3215_p1, %p3209_p10 }
  0x82   : > { %3219 = shalt.err (!%p3216_p3)
}
  0x83   : > { %s4385_s18 = smov 64   ;;  %s4386_s6 = sld [smem:[#allocation33_spill]] }
  0x84   : > { %2968 = dma.hbm_to_vmem [thread:$0]  (!%p3649_p6), %s4333_s12, 256, %s633_s20, [#allocation15], %s4385_s18, %s4385_s18, %s3482_s15  }
  0x89   : > { %s3220_s17 = scalar_lea.hbm %s4386_s6, 256 }
  0x8a   : > { %p3221_p1 = scmp.ne.s32.totalorder %s4386_s6, %s3220_s17  ;;  %p3227_p0 = scmp.lt.u32.totalorder %s3220_s17, %s4386_s6 }
  0x8c   : > { %p3223_p3 = pnand %p3221_p1, %p3665_p8 }
  0x8e   : > { %p3224_p13 = pneg %p3223_p3 }
  0x90   : > { %p3229_p2 = pnand %p3227_p0, %p3224_p13 }
  0x92   : > { %3232 = shalt.err (!%p3229_p2)
}
  0x93   : > { %s3233_s23 = scalar_lea.vmem %s571_s24, 256  ;;  %p3241_p4 = scmp.lt.s32.totalorder %s571_s24, %s571_s24 }
  0x94   : > { %p3234_p5 = scmp.ne.s32.totalorder %s571_s24, %s3233_s23  ;;  %p3242_p10 = scmp.lt.s32.totalorder %s3233_s23, %s3233_s23 }
  0x96   : > { %p3236_p7 = pnand %p3234_p5, %p3665_p8  ;;  %p3243_p11 = por %p3242_p10, %p3241_p4 }
  0x98   : > { %p3237_p9 = pneg %p3236_p7 }
  0x9a   : > { %p3244_p12 = pnand %p3243_p11, %p3237_p9 }
  0x9c   : > { %3247 = shalt.err (!%p3244_p12)
}
  0x9d   : > { %2953 = dma.hbm_to_vmem [thread:$0]  (!%p3649_p6), %s4386_s6, 256, %s571_s24, [#allocation6], %s4385_s18, %s4385_s18, %s3482_s15  }
  0x9e   : > { %s3485_s19 = smov [#allocation10]   ;;  %s3486_s22 = smov [#allocation13]  }
  0x9f   : > { %s594_s1 = sshll.u32 %s3485_s19, 4  ;;  %s622_s17 = sshll.u32 %s3486_s22, 4  ;;  %s595_s1 = int_to_ptr.vmem [resolvable:$true] %s594_s1  ;;  %s623_s17 = int_to_ptr.vmem [resolvable:$true] %s622_s17 }
  0xa0   : > { %s3248_s14 = scalar_lea.hbm %s4329_s8, 256 }
  0xa1   : > { %p3249_p1 = scmp.ne.s32.totalorder %s4329_s8, %s3248_s14  ;;  %p3255_p0 = scmp.lt.u32.totalorder %s3248_s14, %s4329_s8 }
  0xa3   : > { %p3251_p3 = pnand %p3249_p1, %p3665_p8 }
  0xa5   : > { %p3252_p13 = pneg %p3251_p3 }
  0xa7   : > { %p3257_p2 = pnand %p3255_p0, %p3252_p13 }
  0xa9   : > { %3260 = shalt.err (!%p3257_p2)
}
  0xaa   : > { %s3261_s24 = scalar_lea.vmem %s595_s1, 256  ;;  %p3269_p4 = scmp.lt.s32.totalorder %s595_s1, %s595_s1 }
  0xab   : > { %p3262_p5 = scmp.ne.s32.totalorder %s595_s1, %s3261_s24  ;;  %p3270_p10 = scmp.lt.s32.totalorder %s3261_s24, %s3261_s24 }
  0xad   : > { %p3264_p7 = pnand %p3262_p5, %p3665_p8  ;;  %p3271_p11 = por %p3270_p10, %p3269_p4 }
  0xaf   : > { %p3265_p9 = pneg %p3264_p7 }
  0xb1   : > { %p3272_p12 = pnand %p3271_p11, %p3265_p9 }
  0xb3   : > { %3275 = shalt.err (!%p3272_p12)
}
  0xb4   : > { %2959 = dma.hbm_to_vmem [thread:$0]  (!%p3649_p6), %s4329_s8, 256, %s595_s1, [#allocation9], %s4385_s18, %s4385_s18, %s3482_s15  }
  0xb5   : > { %s3276_s28 = scalar_lea.hbm %s4332_s11, 16 }
  0xb6   : > { %p3277_p1 = scmp.ne.s32.totalorder %s4332_s11, %s3276_s28  ;;  %p3283_p0 = scmp.lt.u32.totalorder %s3276_s28, %s4332_s11 }
  0xb8   : > { %p3279_p3 = pnand %p3277_p1, %p3665_p8 }
  0xba   : > { %p3280_p13 = pneg %p3279_p3 }
  0xbc   : > { %p3285_p2 = pnand %p3283_p0, %p3280_p13 }
  0xbe   : > { %3288 = shalt.err (!%p3285_p2)
}
  0xbf   : > { %s3289_s20 = scalar_lea.vmem %s623_s17, 16  ;;  %s3296_s15 = scalar_lea.vmem %s623_s17, 32 }
  0xc0   : > { %p3290_p5 = scmp.ne.s32.totalorder %s623_s17, %s3289_s20  ;;  %p3297_p4 = scmp.lt.s32.totalorder %s623_s17, %s623_s17 }
  0xc1   : > { %p3298_p10 = scmp.lt.s32.totalorder %s3296_s15, %s3289_s20 }
  0xc2   : > { %p3292_p7 = pnand %p3290_p5, %p3665_p8 }
  0xc3   : > { %p3299_p11 = por %p3298_p10, %p3297_p4 }
  0xc4   : > { %p3293_p9 = pneg %p3292_p7 }
  0xc6   : > { %p3300_p12 = pnand %p3299_p11, %p3293_p9 }
  0xc8   : > { %3303 = shalt.err (!%p3300_p12)
}
  0xc9   : > { %2965 = dma.hbm_to_vmem [thread:$0]  (!%p3649_p6), %s4332_s11, 16, %s623_s17, [#allocation12]  }
  0xca   : > { %s3487_s24 = smov [#allocation16]   ;;  %s3304_s22 = scalar_lea.hbm %s4334_s13, 16 }
  0xcb   : > { %s646_s3 = sshll.u32 %s3487_s24, 4  ;;  %p3305_p1 = scmp.ne.s32.totalorder %s4334_s13, %s3304_s22  ;;  %s647_s3 = int_to_ptr.vmem [resolvable:$true] %s646_s3 }
  0xcc   : > { %p3311_p0 = scmp.lt.u32.totalorder %s3304_s22, %s4334_s13 }
  0xcd   : > { %p3307_p3 = pnand %p3305_p1, %p3665_p8 }
  0xcf   : > { %p3308_p13 = pneg %p3307_p3 }
  0xd1   : > { %p3313_p2 = pnand %p3311_p0, %p3308_p13 }
  0xd3   : > { %3316 = shalt.err (!%p3313_p2)
}
  0xd4   : > { %s3317_s17 = scalar_lea.vmem %s647_s3, 16  ;;  %s3324_s23 = scalar_lea.vmem %s647_s3, 32 }
  0xd5   : > { %p3318_p5 = scmp.ne.s32.totalorder %s647_s3, %s3317_s17  ;;  %p3325_p4 = scmp.lt.s32.totalorder %s647_s3, %s647_s3 }
  0xd6   : > { %p3326_p10 = scmp.lt.s32.totalorder %s3324_s23, %s3317_s17 }
  0xd7   : > { %p3320_p7 = pnand %p3318_p5, %p3665_p8 }
  0xd8   : > { %p3327_p11 = por %p3326_p10, %p3325_p4 }
  0xd9   : > { %p3321_p9 = pneg %p3320_p7 }
  0xdb   : > { %p3328_p12 = pnand %p3327_p11, %p3321_p9 }
  0xdd   : > { %3331 = shalt.err (!%p3328_p12)
}
  0xde   : > { %2971 = dma.hbm_to_vmem [thread:$0]  (!%p3649_p6), %s4334_s13, 16, %s647_s3, [#allocation15]  }
  0xdf   : > { %s2612_s4 = sadd.s32 4294967294, %s3476_s27   ;;  %s3838_s5 = sadd.s32 1, %s3476_s27  }
  0xe0   : > { %s127_s18 = ssub.s32 %s3476_s27, %s3838_s5  ;;  %s130_s1 = sadd.s32 1, %s3472_s26 }
  0xe1   : > { %p128_p8 = scmp.eq.s32.totalorder %s127_s18, 0  ;;  %p137_p1 = scmp.ne.s32.totalorder %s3472_s26, %s3468_s25 }
  0xe2   : > { %p138_p3 = scmp.eq.s32.totalorder %s3476_s27, 0  ;;  %p143_p13 = scmp.ne.s32.totalorder %s3468_s25, %s3464_s2 }
  0xe3   : > { %s3849_s24 = scalar_select %p128_p8, %s3472_s26, %s130_s1  }
  0xe4   : > { %p3851_p0 = por %p138_p3, %p137_p1  ;;  %p4388_p2 = scmp.eq.s32.totalorder %s3633_s29, 0 }
  0xe5   : > { %p503_p5 = scmp.eq.s32.totalorder %s3633_s29, 1  ;;  %p509_p7 = scmp.eq.s32.totalorder %s2612_s4, 1 }
  0xe6   : > { %p3857_p6 = por %p4388_p2, %p143_p13  ;;  %p2991_p9 = scmp.lt.s32.totalorder %s3476_s27, 2 }
  0xe7   : > { %s696_s19 = sand.u32 1, %s3472_s26   ;;  %p3864_p4 = por %p503_p5, %p137_p1 }
  0xe8   : > { %p3868_p10 = por %p509_p7, %p143_p13  ;;  %s2623_s30 = sshll.u32 %s696_s19, 3 }
  0xe9   : > { %s4390_s22 = scalar_select %p3864_p4, 1, 0 }
  0xea   : > { %s4391_s28 = scalar_select %p3868_p10, 1, 0 }
  0xeb   : > { %s2624_s14 = sshll.u32 %s3476_s27, 7  ;;  %s4392_s23 = sld [smem:[#allocation30_spill]] }
  0xec   : > { %s700_s15 = scalar_lea.vmem [#allocation2], %s2623_s30  ;;  %p3882_p11 = pnand %p2991_p9, %p3851_p0 }
  0xed   : > { %s707_s4 = sshll.u32 %s700_s15, 4  ;;  %s697_s1 = scalar_lea.sflag [#allocation3], %s696_s19  ;;  %s3878_s4 = int_to_ptr.vmem [resolvable:$true] %s707_s4 }
  0xee   : > { %p3334_p8 = pneg %p3882_p11 }
  0xf1   : > { %s3876_s20 = scalar_lea.hbm %s4392_s23, %s2624_s14  ;;  %s3337_s16 = scalar_lea.hbm %s4392_s23, 256 }
  0xf2   : > { %s3332_s6 = scalar_lea.hbm %s3876_s20, 128  ;;  %p3338_p13 = scmp.lt.u32.totalorder %s3876_s20, %s4392_s23 }
  0xf3   : > { %p3333_p12 = scmp.ne.s32.totalorder %s3876_s20, %s3332_s6  ;;  %p3339_p0 = scmp.lt.u32.totalorder %s3337_s16, %s3332_s6 }
  0xf4   : > { %p3341_p5 = scmp.lt.u32.totalorder %s3332_s6, %s3876_s20 }
  0xf5   : > { %p3335_p1 = pnand %p3334_p8, %p3333_p12  ;;  %p3340_p2 = por %p3339_p0, %p3338_p13 }
  0xf7   : > { %p3336_p3 = pneg %p3335_p1  ;;  %p3342_p7 = por %p3341_p5, %p3340_p2 }
  0xf9   : > { %p3343_p9 = pnand %p3342_p7, %p3336_p3 }
  0xfb   : > { %3346 = shalt.err (!%p3343_p9)
}
  0xfc   : > { %s3347_s19 = scalar_lea.vmem %s3878_s4, 128  ;;  %s3488_s15 = smov [#allocation2]  }
  0xfd   : > { %p3348_p12 = scmp.ne.s32.totalorder %s3878_s4, %s3347_s19  ;;  %s3352_s30 = sshll.u32 %s3488_s15, 4  ;;  %s3353_s30 = int_to_ptr.vmem [resolvable:$false] %s3352_s30 }
  0xfe   : > { %s3354_s14 = scalar_lea.vmem %s3353_s30, 256  ;;  %p3355_p4 = scmp.lt.s32.totalorder %s3878_s4, %s3353_s30 }
  0xff   : > { %p3350_p1 = pnand %p3348_p12, %p3334_p8  ;;  %p3356_p13 = scmp.lt.s32.totalorder %s3354_s14, %s3347_s19 }
 0x101   : > { %p3351_p10 = pneg %p3350_p1  ;;  %p3357_p0 = por %p3356_p13, %p3355_p4 }
 0x103   : > { %p3358_p2 = pnand %p3357_p0, %p3351_p10 }
 0x105   : > { %3361 = shalt.err (!%p3358_p2)
}
 0x106   : > { %2975 = dma.hbm_to_vmem [thread:$0]  (!%p3882_p11), %s3876_s20, 128, %s3878_s4, %s697_s1  }
 0x107   : > { %p4394_p3 = scmp.ne.s32.totalorder %s4380_s0, 0 }
 0x108   : > { %s3914_s6 = sand.u32 (!%p4394_p3), 1, %s3468_s25  }
 0x109   : > { %716 = sbr.rel (%p4394_p3) target bundleno = 4644 (0x1224), region = 100  ;;  %s4355_s16 = sshll.u32 (!%p4394_p3), %s3914_s6, 3 }
 0x10a   : > { %s719_s21 = scalar_lea.sflag (!%p4394_p3), [#allocation3], %s3914_s6  ;;  %s3920_s17 = scalar_lea.vmem (!%p4394_p3), [#allocation2], %s4355_s16 }
 0x110   : > { %3435 = dma.done.wait (%p3857_p6), %s719_s21, 128  }
 0x111   : > { %3437 = vsyncadd (%p3857_p6), %s719_s21, 4294967168  ;;  %p4395_p4 = scmp.eq.s32.totalorder %s3633_s29, 0 }
 0x113   : > { %3439 = dma.done.wait (%p4395_p4), [#allocation6], 512   ;;  %p4396_p10 = pmov %p4395_p4 }
 0x114   : > { %p4397_p11 = pmov %p4395_p4 }
 0x115   : > { %3441 = vsyncadd (%p4396_p10), [#allocation6], 4294966784 }
 0x116   : > { %3443 = dma.done.wait (%p4397_p11), [#allocation9], 272   ;;  %p4398_p8 = pmov %p4395_p4 }
 0x117   : > { %p4399_p5 = pmov %p4395_p4 }
 0x118   : > { %3445 = vsyncadd (%p4398_p8), [#allocation9], 4294967024 }
 0x119   : > { %3447 = dma.done.wait (%p4399_p5), [#allocation12], 32   ;;  %p4400_p7 = pmov %p4395_p4 }
 0x11a   : > { %p4401_p6 = pmov %p4395_p4 }
 0x11b   : > { %3449 = vsyncadd (%p4400_p7), [#allocation12], 4294967264 }
 0x11c   : > { %3451 = dma.done.wait (%p4401_p6), [#allocation15], 272   ;;  %p4402_p9 = pmov %p4395_p4 }
 0x11d   : > { %p830_p12 = scmp.lt.s32.totalorder %s3633_s29, 1  ;;  %v3489_v0 = vmov 0.0   ;;  %vm3490_vm0 = vmmov 0   ;;  %s4403_s18 = sld [smem:[#allocation27_spill]]  ;;  %v3054_v1 = vld [vmem:[#allocation5] sm:$0xff]   ;;  %v3055_v2 = vld [vmem:[#allocation5 + $0x8] sm:$0xff]  }
 0x11e   : > { %3453 = vsyncadd (%p4402_p9), [#allocation15], 4294967024  ;;  %2753 = vmatprep.subr.bf16.mxu1 %v3489_v0  ;;  %2757 = vmatprep.mubr.msk.bf16.mxu1 %vm3490_vm0, %v3489_v0  ;;  %vm877_vm1 = vcmask 261120   ;;  %s4404_s30 = sld [smem:[#allocation32_spill]]  ;;  %s3491_s14 = smov 104   ;;  %vm938_vm2 = vcmask 64512  }
 0x11f   : > { %s831_s0 = scalar_select %p830_p12, %s3633_s29, 1  ;;  %2767 = vmatprep.subr.bf16.mxu0 %v3489_v0  ;;  %2769 = vmatprep.mubr.msk.bf16.mxu0 %vm3490_vm0, %v3489_v0  ;;  %vm1193_vm3 = vcmask 1043456   ;;  %vm1394_vm4 = vcmask 130048   ;;  %vm1396_vm5 = vcmask 195584   ;;  %vm2302_vm6 = vcmask 523264  }
 0x120   : > { %2754 = vmatpush3.bf16.msra.mxu1 %v3054_v1  ;;  %s3492_s21 = smov 120   ;;  %s4360_s20 = smov 96  }
 0x121   : > { %s3950_s3 = sshll.u32 %s831_s0, 3  ;;  %2755 = vmatprep.subr.bf16.mxu1 %v3489_v0  ;;  %s3493_s0 = smov 112  }
 0x122   : > { %s3495_s15 = smov 64   ;;  %s4357_s4 = smov 16  }
 0x123   : > { %s833_s1 = scalar_lea.vmem %s4403_s18, %s3950_s3  ;;  %s4356_s18 = smov 24  }
 0x124   : > { %v3956_v3 = vld [vmem:[%s833_s1] sm:$0xff]  ;;  %2756 = vmatpush3.bf16.msra.mxu1 %v3055_v2  ;;  %s4405_s1 = sld [smem:[#allocation29_spill]]  ;;  %p4418_p13 = scmp.ne.s32.totalorder %s4390_s22, 0 }
 0x125   : > { %v853_v4 = vpack.c.bf16 %v3956_v3, %v3956_v3  ;;  %2761 = vmatprep.subr.bf16.mxu1 %v3489_v0  ;;  %v2642_v5 = vld [vmem:[%s4404_s30] ss:$0 sm:$0xff]  ;;  %s4358_s30 = smov 8  }
 0x127   : > { %2758 = vmatmul.mubr.msk.bf16.vlgmr.msra.gmra.mrb[0].mxu1 %vm877_vm1, %v853_v4 }
 0x128   : > { %2763 = vmatprep.mubr.msk.bf16.mxu1 %vm3490_vm0, %v3489_v0 }
 0x12a   : > { %s841_s19 = scalar_lea.vmem %s4405_s1, %s3950_s3  ;;  %s4411_s1 = smov 16  }
 0x12b   : > { %v845_v26 = vld [vmem:[%s841_s19] sm:$0xff]  ;;  %s4412_s19 = smov 24  }
 0x12c   : > { %v2640_v27 = vadd.f32 -1.0, %v845_v26 }
 0x12e   : > { %v847_v28 = vmul.f32 1e+09, %v2640_v27 }
 0x1fa   : > { %v915_v6 = vpop.f32.mrb[0].mxu1 }
 0x1fb   : > { %v916_v7 = vadd.f32 %v2642_v5, %v915_v6  ;;  %v2759_v8 = vpop.f32.mrb[1].mxu1 }
 0x1fc   : > { %v918_v9 = vpop.f32.mrb[2].mxu1 }
 0x1fd   : > { %928 = vrot.lane.b32.xlu1 %v916_v7, %s3491_s14  ;;  %922 = vrot.lane.b32.xlu0 %v916_v7, %s3492_s21  ;;  %v2760_v10 = vpop.f32.mrb[3].mxu1  ;;  %v3970_v11 = vpack.c.bf16 %v916_v7, %v916_v7 }
 0x201   : > { %925 = vrot.lane.b32.xlu0 %v916_v7, %s3493_s0  ;;  %936 = vrot.lane.b32.xlu1 %v3970_v11, %s4360_s20 }
 0x26f   : > { %v929_v12 = vpop.permute.xlu1 %928  ;;  %v923_v13 = vpop.permute.xlu0 %922 }
 0x270   : > { %v3975_v14 = vpack.c.bf16 %v923_v13, %v923_v13  ;;  %v3979_v17 = vpack.c.bf16 %v929_v12, %v929_v12 }
 0x272   : > { %986 = vrot.lane.b32.xlu0 %v3975_v14, %s4360_s20 }
 0x273   : > { %v926_v15 = vpop.permute.xlu0 %925  ;;  %v937_v16 = vpop.permute.xlu1 %936 }
 0x274   : > { %v3981_v18 = vpack.c.bf16 %v926_v15, %v926_v15  ;;  %v943_v19 = vsel %vm938_vm2, %v937_v16, 0 }
 0x275   : > { %2762 = vmatpush3.bf16.xpose.msra.mxu1 %v943_v19 }
 0x276   : > { %1084 = vrot.lane.b32.xlu0 %v3979_v17, %s4360_s20  ;;  %1035 = vrot.lane.b32.xlu1 %v3981_v18, %s4360_s20 }
 0x277   : > { %2773 = vmatprep.subr.bf16.mxu1 %v3489_v0 }
 0x27c   : > { %2764 = vmatmul.mubr.msk.bf16.vlgmr.msra.gmra.mrb[4].mxu1 %vm938_vm2, %v3970_v11 }
 0x27d   : > { %2775 = vmatprep.mubr.msk.bf16.mxu1 %vm3490_vm0, %v3489_v0 }
 0x2e4   : > { %v987_v20 = vpop.permute.xlu0 %986 }
 0x2e5   : > { %v992_v21 = vsel %vm938_vm2, %v987_v20, 0 }
 0x2e6   : > { %2768 = vmatpush3.bf16.xpose.msra.mxu0 %v992_v21 }
 0x2e7   : > { %2779 = vmatprep.subr.bf16.mxu0 %v3489_v0 }
 0x2e8   : > { %v1036_v22 = vpop.permute.xlu1 %1035  ;;  %v1085_v24 = vpop.permute.xlu0 %1084 }
 0x2e9   : > { %v1041_v23 = vsel %vm938_vm2, %v1036_v22, 0  ;;  %v1090_v25 = vsel %vm938_vm2, %v1085_v24, 0 }
 0x2ea   : > { %2774 = vmatpush3.bf16.xpose.msra.mxu1 %v1041_v23 }
 0x2eb   : > { %2785 = vmatprep.subr.bf16.mxu1 %v3489_v0 }
 0x2ed   : > { %2770 = vmatmul.mubr.msk.bf16.vlgmr.msra.gmra.mrb[0].mxu0 %vm938_vm2, %v3975_v14 }
 0x2ee   : > { %2780 = vmatpush3.bf16.xpose.msra.mxu0 %v1090_v25  ;;  %2781 = vmatprep.mubr.msk.bf16.mxu0 %vm3490_vm0, %v3489_v0 }
 0x2ef   : > { %2791 = vmatprep.subr.bf16.mxu0 %v3489_v0 }
 0x2f1   : > { %2776 = vmatmul.mubr.msk.bf16.vlgmr.msra.gmra.mrb[8].mxu1 %vm938_vm2, %v3981_v18 }
 0x2f2   : > { %2787 = vmatprep.mubr.msk.bf16.mxu1 %vm3490_vm0, %v3489_v0 }
 0x2f5   : > { %2782 = vmatmul.mubr.msk.bf16.vlgmr.msra.gmra.mrb[4].mxu0 %vm938_vm2, %v3979_v17 }
 0x2f6   : > { %2793 = vmatprep.mubr.msk.bf16.mxu0 %vm3490_vm0, %v3489_v0 }
 0x34f   : > { %v979_v29 = vpop.f32.mrb[4].mxu1 }
 0x350   : > { %v1132_v30 = vmul.f32 0.35355338, %v979_v29  ;;  %v2765_v31 = vpop.f32.mrb[5].mxu1 }
 0x351   : > { %v982_v32 = vpop.f32.mrb[6].mxu1 }
 0x352   : > { %v2766_v33 = vpop.f32.mrb[7].mxu1  ;;  %v1136_v34 = vadd.f32 %v1132_v30, %v847_v28 }
 0x354   : > { %v1140_v35 = vsel %vm938_vm2, %v1136_v34, -inf }
 0x355   : > { %1141 = vmax.xlane.f32.xlu1 %v1140_v35 }
 0x3c0   : > { %v1028_v36 = vpop.f32.mrb[0].mxu0 }
 0x3c1   : > { %v1133_v37 = vmul.f32 0.35355338, %v1028_v36  ;;  %v2771_v38 = vpop.f32.mrb[1].mxu0 }
 0x3c2   : > { %v1031_v39 = vpop.f32.mrb[2].mxu0 }
 0x3c3   : > { %v2772_v40 = vpop.f32.mrb[3].mxu0  ;;  %v1137_v41 = vadd.f32 %v1133_v37, %v847_v28 }
 0x3c4   : > { %v1077_v42 = vpop.f32.mrb[8].mxu1 }
 0x3c5   : > { %v1134_v43 = vmul.f32 0.35355338, %v1077_v42  ;;  %v2777_v44 = vpop.f32.mrb[9].mxu1  ;;  %v1143_v45 = vsel %vm938_vm2, %v1137_v41, -inf }
 0x3c6   : > { %1144 = vmax.xlane.f32.xlu0 %v1143_v45  ;;  %v1080_v46 = vpop.f32.mrb[10].mxu1  ;;  %v3057_v44 = vld [vmem:[#allocation7 + $0x8] sm:$0xff]  }
 0x3c7   : > { %v2778_v47 = vpop.f32.mrb[11].mxu1  ;;  %v1138_v48 = vadd.f32 %v1134_v43, %v847_v28  ;;  %v3056_v43 = vld [vmem:[#allocation7] sm:$0xff]  }
 0x3c8   : > { %v1126_v49 = vpop.f32.mrb[4].mxu0 }
 0x3c9   : > { %v1135_v50 = vmul.f32 0.35355338, %v1126_v49  ;;  %v2783_v51 = vpop.f32.mrb[5].mxu0  ;;  %v1146_v52 = vsel %vm938_vm2, %v1138_v48, -inf }
 0x3ca   : > { %v1129_v53 = vpop.f32.mrb[6].mxu0  ;;  %1147 = vmax.xlane.f32.xlu0 %v1146_v52 }
 0x3cb   : > { %v2784_v54 = vpop.f32.mrb[7].mxu0  ;;  %v1139_v55 = vadd.f32 %v1135_v50, %v847_v28 }
 0x3cd   : > { %v1149_v56 = vsel %vm938_vm2, %v1139_v55, -inf }
 0x3ce   : > { %1150 = vmax.xlane.f32.xlu1 %v1149_v56 }
 0x3df   : > { %1237 = vrot.lane.b32.xlu1 %v3975_v14, %s3495_s15 }
 0x3e0   : > { %1188 = vrot.lane.b32.xlu0 %v3970_v11, %s3495_s15 }
 0x3e2   : > { %v1142_v57 = vpop.xlane.xlu1 %1141 }
 0x3e3   : > { %v1152_v58 = vsub.f32 %v1136_v34, %v1142_v57 }
 0x3e5   : > { %v1156_v59 = vmul.f32 1.442695, %v1152_v58 }
 0x3e7   : > { %3070 = vpow2.f32 %v1156_v59 }
 0x3f1   : > { %v3071_v60 = vpop.eup %3070 }
 0x3f2   : > { %v1164_v61 = vsel %vm938_vm2, %v3071_v60, 0.0 }
 0x3ff   : > { %1165 = vadd.xlane.f32.xlu0 %v1164_v61 }
 0x453   : > { %v1145_v62 = vpop.xlane.xlu0 %1144 }
 0x454   : > { %v1153_v63 = vsub.f32 %v1137_v41, %v1145_v62 }
 0x456   : > { %v1158_v1 = vmul.f32 1.442695, %v1153_v63 }
 0x457   : > { %v1148_v2 = vpop.xlane.xlu0 %1147 }
 0x458   : > { %3072 = vpow2.f32 %v1158_v1  ;;  %v1154_v4 = vsub.f32 %v1138_v48, %v1148_v2  ;;  %v2654_v1 = vld [vmem:[#allocation8] ss:$0 sm:$0xff] }
 0x45a   : > { %v1160_v5 = vmul.f32 1.442695, %v1154_v4 }
 0x45b   : > { %v1151_v6 = vpop.xlane.xlu1 %1150  ;;  %v1189_v7 = vpop.permute.xlu0 %1188 }
 0x45c   : > { %3074 = vpow2.f32 %v1160_v5  ;;  %v1155_v8 = vsub.f32 %v1139_v55, %v1151_v6  ;;  %v1195_v9 = vsel %vm1193_vm3, %v1189_v7, 0 }
 0x45d   : > { %2786 = vmatpush3.bf16.msra.mxu1 %v1195_v9 }
 0x45e   : > { %v1162_v10 = vmul.f32 1.442695, %v1155_v8  ;;  %2797 = vmatprep.subr.bf16.mxu1 %v3489_v0 }
 0x45f   : > { %v1238_v11 = vpop.permute.xlu1 %1237 }
 0x460   : > { %3076 = vpow2.f32 %v1162_v10  ;;  %v1243_v12 = vsel %vm1193_vm3, %v1238_v11, 0 }
 0x461   : > { %2792 = vmatpush3.bf16.msra.mxu0 %v1243_v12 }
 0x462   : > { %v3073_v13 = vpop.eup %3072  ;;  %2803 = vmatprep.subr.bf16.mxu0 %v3489_v0 }
 0x463   : > { %v1167_v14 = vsel %vm938_vm2, %v3073_v13, 0.0 }
 0x464   : > { %1168 = vadd.xlane.f32.xlu1 %v1167_v14 }
 0x466   : > { %v3075_v15 = vpop.eup %3074 }
 0x467   : > { %v1170_v16 = vsel %vm938_vm2, %v3075_v15, 0.0 }
 0x468   : > { %1171 = vadd.xlane.f32.xlu0 %v1170_v16 }
 0x46a   : > { %v3077_v19 = vpop.eup %3076 }
 0x46b   : > { %v1173_v20 = vsel %vm938_vm2, %v3077_v19, 0.0 }
 0x46c   : > { %1174 = vadd.xlane.f32.xlu1 %v1173_v20  ;;  %v3060_v20 = vld [vmem:[#allocation10] sm:$0xff]  }
 0x47d   : > { %1285 = vrot.lane.b32.xlu1 %v3981_v18, %s3495_s15 }
 0x47e   : > { %1333 = vrot.lane.b32.xlu0 %v3979_v17, %s3495_s15  ;;  %s2697_s15 = sshll.u32 %s3633_s29, 9 }
 0x48c   : > { %v1166_v21 = vpop.xlane.xlu0 %1165 }
 0x48d   : > { %3078 = vrcp.f32 %v1166_v21  ;;  %v3061_v21 = vld [vmem:[#allocation10 + $0x8] sm:$0xff]  }
 0x497   : > { %v3079_v22 = vpop.eup %3078 }
 0x498   : > { %v1180_v23 = vmul.f32 %v3079_v22, %v3071_v60 }
 0x49a   : > { %v1184_v24 = vpack.c.bf16 %v1180_v23, %v1180_v23 }
 0x49c   : > { %2788 = vmatmul.mubr.msk.bf16.vlgmr.msra.gmra.mrb[12].mxu1 %vm938_vm2, %v1184_v24 }
 0x49d   : > { %2799 = vmatprep.mubr.msk.bf16.mxu1 %vm3490_vm0, %v3489_v0 }
 0x4f1   : > { %v1169_v25 = vpop.xlane.xlu1 %1168 }
 0x4f2   : > { %3080 = vrcp.f32 %v1169_v25 }
 0x4f5   : > { %v1172_v26 = vpop.xlane.xlu0 %1171 }
 0x4f6   : > { %3082 = vrcp.f32 %v1172_v26 }
 0x4f9   : > { %v1175_v27 = vpop.xlane.xlu1 %1174  ;;  %v1334_v17 = vpop.permute.xlu0 %1333 }
 0x4fa   : > { %3084 = vrcp.f32 %v1175_v27  ;;  %v1339_v34 = vsel %vm1193_vm3, %v1334_v17, 0 }
 0x4fc   : > { %v3081_v18 = vpop.eup %3080 }
 0x4fd   : > { %v1181_v28 = vmul.f32 %v3081_v18, %v3073_v13  ;;  %v1286_v29 = vpop.permute.xlu1 %1285 }
 0x4fe   : > { %v1291_v30 = vsel %vm1193_vm3, %v1286_v29, 0 }
 0x4ff   : > { %2798 = vmatpush3.bf16.msra.mxu1 %v1291_v30  ;;  %v1185_v31 = vpack.c.bf16 %v1181_v28, %v1181_v28  ;;  %v2664_v30 = vld [vmem:[#allocation13] ss:$0 sm:$0xff] }
 0x500   : > { %v3083_v32 = vpop.eup %3082  ;;  %2809 = vmatprep.subr.bf16.mxu1 %v3489_v0 }
 0x501   : > { %v1182_v33 = vmul.f32 %v3083_v32, %v3075_v15  ;;  %2794 = vmatmul.mubr.msk.bf16.vlgmr.msra.gmra.mrb[8].mxu0 %vm938_vm2, %v1185_v31  ;;  %v3058_v15 = vld [vmem:[%s4331_s10] sm:$0xff]  }
 0x502   : > { %2804 = vmatpush3.bf16.msra.mxu0 %v1339_v34  ;;  %2805 = vmatprep.mubr.msk.bf16.mxu0 %vm3490_vm0, %v3489_v0 }
 0x503   : > { %v1186_v35 = vpack.c.bf16 %v1182_v33, %v1182_v33  ;;  %2817 = vmatprep.subr.bf16.mxu0 %v3489_v0 }
 0x504   : > { %v3085_v36 = vpop.eup %3084 }
 0x505   : > { %v1183_v37 = vmul.f32 %v3085_v36, %v3077_v19  ;;  %2800 = vmatmul.mubr.msk.bf16.vlgmr.msra.gmra.mrb[16].mxu1 %vm938_vm2, %v1186_v35 }
 0x506   : > { %2813 = vmatprep.mubr.msk.bf16.mxu1 %vm3490_vm0, %v3489_v0  ;;  %2810 = vmatpush3.bf16.msra.mxu1 %v3056_v43 }
 0x507   : > { %v1187_v38 = vpack.c.bf16 %v1183_v37, %v1183_v37  ;;  %2811 = vmatprep.subr.bf16.mxu1 %v3489_v0 }
 0x509   : > { %2806 = vmatmul.mubr.msk.bf16.vlgmr.msra.gmra.mrb[12].mxu0 %vm938_vm2, %v1187_v38 }
 0x50a   : > { %2821 = vmatprep.mubr.msk.bf16.mxu0 %vm3490_vm0, %v3489_v0  ;;  %2812 = vmatpush3.bf16.msra.mxu1 %v3057_v44 }
 0x50b   : > { %2825 = vmatprep.subr.bf16.mxu1 %v3489_v0  ;;  %2818 = vmatpush3.bf16.msra.mxu0 %v3060_v20 }
 0x50c   : > { %2819 = vmatprep.subr.bf16.mxu0 %v3489_v0 }
 0x50f   : > { %2820 = vmatpush3.bf16.msra.mxu0 %v3061_v21 }
 0x510   : > { %2833 = vmatprep.subr.bf16.mxu0 %v3489_v0 }
 0x56f   : > { %v1231_v39 = vpop.f32.mrb[12].mxu1 }
 0x570   : > { %v2789_v40 = vpop.f32.mrb[13].mxu1 }
 0x571   : > { %v1234_v41 = vpop.f32.mrb[14].mxu1 }
 0x572   : > { %v2790_v42 = vpop.f32.mrb[15].mxu1  ;;  %v2660_v41 = vld [vmem:[#allocation11] ss:$0 sm:$0xff] }
 0x5d4   : > { %v1279_v45 = vpop.f32.mrb[8].mxu0 }
 0x5d5   : > { %1382 = vrot.lane.b32.xlu1 %v1279_v45, %s4358_s30  ;;  %v2795_v46 = vpop.f32.mrb[9].mxu0  ;;  %s4406_s30 = sld [smem:[#allocation28_spill]] }
 0x5d6   : > { %v1282_v47 = vpop.f32.mrb[10].mxu0 }
 0x5d7   : > { %v2796_v48 = vpop.f32.mrb[11].mxu0 }
 0x5d8   : > { %v1327_v49 = vpop.f32.mrb[16].mxu1 }
 0x5d9   : > { %1386 = vrot.lane.b32.xlu0 %v1327_v49, %s4357_s4  ;;  %v2801_v50 = vpop.f32.mrb[17].mxu1  ;;  %s4417_s4 = sld [smem:[#allocation42_spill]] }
 0x5da   : > { %v1330_v51 = vpop.f32.mrb[18].mxu1 }
 0x5db   : > { %v2802_v52 = vpop.f32.mrb[19].mxu1  ;;  %s837_s20 = scalar_lea.vmem %s4406_s30, %s3950_s3  ;;  %s4413_s3 = sld [smem:[#allocation35_spill]] }
 0x5dc   : > { %v1375_v53 = vpop.f32.mrb[12].mxu0  ;;  %v844_v16 = vld [vmem:[%s837_s20] sm:$0xff]  ;;  %s4407_s20 = sld [smem:[#allocation39_spill]] }
 0x5dd   : > { %1390 = vrot.lane.b32.xlu1 %v1375_v53, %s4356_s18  ;;  %v2807_v54 = vpop.f32.mrb[13].mxu0  ;;  %v1561_v19 = vpack.c.bf16 %v844_v16, %v844_v16  ;;  %s4408_s18 = sld [smem:[#allocation40_spill]] }
 0x5de   : > { %v1378_v55 = vpop.f32.mrb[14].mxu0 }
 0x5df   : > { %v2808_v56 = vpop.f32.mrb[15].mxu0 }
 0x5e2   : > { %v4089_v26 = vld [vmem:[%s4407_s20] ss:$0 sm:$0xff] }
 0x5e3   : > { %v4094_v18 = vld [vmem:[%s4408_s18] ss:$0 sm:$0xff]  ;;  %s4415_s18 = sld [smem:[#allocation36_spill]] }
 0x647   : > { %v1383_v57 = vpop.permute.xlu1 %1382 }
 0x648   : > { %v1393_v59 = vsel %vm938_vm2, %v1231_v39, %v1383_v57 }
 0x64b   : > { %v1387_v58 = vpop.permute.xlu0 %1386 }
 0x64c   : > { %v1395_v60 = vsel %vm1394_vm4, %v1393_v59, %v1387_v58 }
 0x64f   : > { %v1391_v61 = vpop.permute.xlu1 %1390 }
 0x650   : > { %v1397_v62 = vsel %vm1396_vm5, %v1395_v60, %v1391_v61  ;;  %v848_v60 = vld [vmem:[%s3920_s17] sm:$0xff]  ;;  %s4409_s17 = smov 96  }
 0x651   : > { %v1398_v63 = vpack.c.bf16 %v1397_v62, %v1397_v62  ;;  %v2641_v61 = vadd.f32 -1.0, %v848_v60 }
 0x653   : > { %2814 = vmatmul.mubr.msk.bf16.vlgmr.msra.gmra.mrb[20].mxu1 %vm877_vm1, %v1398_v63  ;;  %v850_v62 = vmul.f32 1e+09, %v2641_v61 }
 0x654   : > { %2829 = vmatprep.mubr.msk.bf16.mxu1 %vm3490_vm0, %v3489_v0  ;;  %2826 = vmatpush3.bf16.msra.mxu1 %v3058_v15 }
 0x655   : > { %2827 = vmatprep.subr.bf16.mxu1 %v3489_v0 }
 0x726   : > { %v1459_v2 = vpop.f32.mrb[20].mxu1 }
 0x727   : > { %v1460_v4 = vadd.f32 %v2654_v1, %v1459_v2  ;;  %v2815_v5 = vpop.f32.mrb[21].mxu1 }
 0x728   : > { %v1462_v6 = vpop.f32.mrb[22].mxu1 }
 0x729   : > { %v4063_v7 = vadd.f32 %v1460_v4, %v3956_v3  ;;  %v2816_v8 = vpop.f32.mrb[23].mxu1  ;;  %v3059_v3 = vld [vmem:[%s4331_s10 + $0x8] sm:$0xff]  }
 0x72a   : > { %2828 = vmatpush3.bf16.msra.mxu1 %v3059_v3 }
 0x72b   : > { %v1466_v9 = vsel %vm877_vm1, %v4063_v7, 0.0  ;;  %2839 = vmatprep.subr.bf16.mxu1 %v3489_v0 }
 0x72c   : > { %1467 = vadd.xlane.f32.xlu0 %v1466_v9 }
 0x72d   : > { %2830 = vmatmul.mubr.msk.bf16.vlgmr.msra.gmra.mrb[24].mxu1 %vm877_vm1, %v1561_v19 }
 0x72e   : > { %2841 = vmatprep.mubr.msk.bf16.mxu1 %vm3490_vm0, %v3489_v0 }
 0x7b9   : > { %v1468_v10 = vpop.xlane.xlu0 %1467 }
 0x7ba   : > { %v1470_v11 = vmul.f32 0.03125, %v1468_v10 }
 0x7bc   : > { %v1471_v12 = vsub.f32 %v4063_v7, %v1470_v11 }
 0x7be   : > { %v1472_v13 = vmul.f32 %v1471_v12, %v1471_v12 }
 0x7c0   : > { %v1473_v14 = vsel %vm877_vm1, %v1472_v13, 0.0 }
 0x7c1   : > { %1474 = vadd.xlane.f32.xlu1 %v1473_v14 }
 0x800   : > { %v1622_v31 = vpop.f32.mrb[24].mxu1 }
 0x801   : > { %v1623_v32 = vadd.f32 %v2664_v30, %v1622_v31  ;;  %v2831_v33 = vpop.f32.mrb[25].mxu1 }
 0x802   : > { %v1625_v34 = vpop.f32.mrb[26].mxu1 }
 0x803   : > { %1642 = vrot.lane.b32.xlu1 %v1623_v32, %s3493_s0  ;;  %v2832_v35 = vpop.f32.mrb[27].mxu1  ;;  %1639 = vrot.lane.b32.xlu0 %v1623_v32, %s3492_s21  ;;  %v4103_v36 = vpack.c.bf16 %v1623_v32, %v1623_v32 }
 0x805   : > { %v1660_v37 = vsel %vm938_vm2, %v4103_v36, 0 }
 0x807   : > { %1645 = vrot.lane.b32.xlu1 %v1623_v32, %s3491_s14 }
 0x84e   : > { %v1475_v22 = vpop.xlane.xlu1 %1474 }
 0x84f   : > { %v1476_v23 = vmul.f32 0.03125, %v1475_v22 }
 0x851   : > { %v1477_v24 = vadd.f32 1e-06, %v1476_v23 }
 0x853   : > { %3086 = vrsqrt.f32 %v1477_v24 }
 0x85d   : > { %v3087_v25 = vpop.eup %3086 }
 0x85e   : > { %v1479_v27 = vmul.f32 %v3087_v25, %v1471_v12 }
 0x860   : > { %v1486_v28 = vmul.f32 %v4089_v26, %v1479_v27 }
 0x862   : > { %v1493_v29 = vadd.f32 %v4094_v18, %v1486_v28 }
 0x864   : > { %v1494_v17 = vpack.c.bf16 %v1493_v29, %v1493_v29 }
 0x866   : > { %2822 = vmatmul.mubr.msk.bf16.vlgmr.msra.gmra.mrb[16].mxu0 %vm877_vm1, %v1494_v17 }
 0x867   : > { %2835 = vmatprep.mubr.msk.bf16.mxu0 %vm3490_vm0, %v3489_v0  ;;  %2834 = vmatpush3.bf16.xpose.msra.mxu0 %v1660_v37 }
 0x868   : > { %2845 = vmatprep.subr.bf16.mxu0 %v3489_v0 }
 0x875   : > { %v1640_v38 = vpop.permute.xlu0 %1639  ;;  %v1643_v42 = vpop.permute.xlu1 %1642 }
 0x876   : > { %v4109_v39 = vpack.c.bf16 %v1640_v38, %v1640_v38  ;;  %v4114_v43 = vpack.c.bf16 %v1643_v42, %v1643_v42 }
 0x878   : > { %v1706_v40 = vsel %vm938_vm2, %v4109_v39, 0  ;;  %v1752_v50 = vsel %vm938_vm2, %v4114_v43, 0 }
 0x879   : > { %2840 = vmatpush3.bf16.xpose.msra.mxu1 %v1706_v40  ;;  %v1646_v51 = vpop.permute.xlu1 %1645 }
 0x87a   : > { %2851 = vmatprep.subr.bf16.mxu1 %v3489_v0  ;;  %v4125_v52 = vpack.c.bf16 %v1646_v51, %v1646_v51 }
 0x87c   : > { %v1798_v55 = vsel %vm938_vm2, %v4125_v52, 0 }
 0x939   : > { %v1555_v44 = vpop.f32.mrb[16].mxu0 }
 0x93a   : > { %v1556_v45 = vadd.f32 %v2660_v41, %v1555_v44  ;;  %v2823_v46 = vpop.f32.mrb[17].mxu0 }
 0x93b   : > { %v1558_v47 = vpop.f32.mrb[18].mxu0 }
 0x93c   : > { %v1648_v48 = vpack.c.bf16 %v1556_v45, %v1556_v45  ;;  %v2824_v49 = vpop.f32.mrb[19].mxu0  ;;  %1635 = vrot.lane.b32.xlu1 %v1556_v45, %s3491_s14  ;;  %1629 = vrot.lane.b32.xlu0 %v1556_v45, %s3492_s21  ;;  %s2636_s14 = sshll.u32 %s3914_s6, 5 }
 0x93d   : > { %s4159_s21 = scalar_lea.vmem [#allocation18], %s2636_s14 }
 0x93e   : > { %2836 = vmatmul.mubr.msk.bf16.vlgmr.msra.gmra.mrb[20].mxu0 %vm938_vm2, %v1648_v48  ;;  %s2395_s16 = sshll.u32 %s4159_s21, 4  ;;  %s4241_s16 = int_to_ptr.vmem [resolvable:$true] %s2395_s16 }
 0x93f   : > { %2846 = vmatpush3.bf16.xpose.msra.mxu0 %v1752_v50  ;;  %2847 = vmatprep.mubr.msk.bf16.mxu0 %vm3490_vm0, %v3489_v0 }
 0x940   : > { %1632 = vrot.lane.b32.xlu0 %v1556_v45, %s3493_s0  ;;  %2857 = vmatprep.subr.bf16.mxu0 %v3489_v0  ;;  %s4410_s0 = smov 8  }
 0x9ae   : > { %v1630_v53 = vpop.permute.xlu0 %1629  ;;  %v1636_v58 = vpop.permute.xlu1 %1635 }
 0x9af   : > { %v1649_v54 = vpack.c.bf16 %v1630_v53, %v1630_v53  ;;  %v1651_v59 = vpack.c.bf16 %v1636_v58, %v1636_v58 }
 0x9b1   : > { %2842 = vmatmul.mubr.msk.bf16.vlgmr.msra.gmra.mrb[28].mxu1 %vm938_vm2, %v1649_v54 }
 0x9b2   : > { %2852 = vmatpush3.bf16.xpose.msra.mxu1 %v1798_v55  ;;  %v1633_v56 = vpop.permute.xlu0 %1632  ;;  %2853 = vmatprep.mubr.msk.bf16.mxu1 %vm3490_vm0, %v3489_v0 }
 0x9b3   : > { %v1650_v57 = vpack.c.bf16 %v1633_v56, %v1633_v56  ;;  %2863 = vmatprep.subr.bf16.mxu1 %v3489_v0 }
 0x9b5   : > { %2848 = vmatmul.mubr.msk.bf16.vlgmr.msra.gmra.mrb[24].mxu0 %vm938_vm2, %v1650_v57 }
 0x9b6   : > { %2859 = vmatprep.mubr.msk.bf16.mxu0 %vm3490_vm0, %v3489_v0 }
 0x9b9   : > { %2854 = vmatmul.mubr.msk.bf16.vlgmr.msra.gmra.mrb[32].mxu1 %vm938_vm2, %v1651_v59 }
 0x9ba   : > { %2865 = vmatprep.mubr.msk.bf16.mxu1 %vm3490_vm0, %v3489_v0 }
 0xa11   : > { %v1696_v63 = vpop.f32.mrb[20].mxu0 }
 0xa12   : > { %v1840_v1 = vmul.f32 0.35355338, %v1696_v63  ;;  %v2837_v2 = vpop.f32.mrb[21].mxu0 }
 0xa13   : > { %v1699_v4 = vpop.f32.mrb[22].mxu0 }
 0xa14   : > { %v2838_v5 = vpop.f32.mrb[23].mxu0  ;;  %v1844_v6 = vadd.f32 %v1840_v1, %v850_v62 }
 0xa16   : > { %v1848_v8 = vsel %vm938_vm2, %v1844_v6, -inf }
 0xa17   : > { %1849 = vmax.xlane.f32.xlu0 %v1848_v8 }
 0xa84   : > { %v1742_v9 = vpop.f32.mrb[28].mxu1 }
 0xa85   : > { %v1841_v10 = vmul.f32 0.35355338, %v1742_v9  ;;  %v2843_v11 = vpop.f32.mrb[29].mxu1 }
 0xa86   : > { %v1745_v12 = vpop.f32.mrb[30].mxu1 }
 0xa87   : > { %v2844_v13 = vpop.f32.mrb[31].mxu1  ;;  %v1845_v14 = vadd.f32 %v1841_v10, %v850_v62 }
 0xa88   : > { %v1788_v15 = vpop.f32.mrb[24].mxu0 }
 0xa89   : > { %v1842_v3 = vmul.f32 0.35355338, %v1788_v15  ;;  %v2849_v16 = vpop.f32.mrb[25].mxu0  ;;  %v1851_v19 = vsel %vm938_vm2, %v1845_v14, -inf }
 0xa8a   : > { %v1791_v20 = vpop.f32.mrb[26].mxu0  ;;  %1852 = vmax.xlane.f32.xlu1 %v1851_v19  ;;  %v3062_v19 = vld [vmem:[#allocation14] sm:$0xff]  }
 0xa8b   : > { %v2850_v21 = vpop.f32.mrb[27].mxu0  ;;  %v1846_v22 = vadd.f32 %v1842_v3, %v850_v62  ;;  %v3063_v20 = vld [vmem:[#allocation14 + $0x8] sm:$0xff]  }
 0xa8c   : > { %v1834_v23 = vpop.f32.mrb[32].mxu1 }
 0xa8d   : > { %v1843_v24 = vmul.f32 0.35355338, %v1834_v23  ;;  %v2855_v25 = vpop.f32.mrb[33].mxu1  ;;  %v1854_v27 = vsel %vm938_vm2, %v1846_v22, -inf }
 0xa8e   : > { %1855 = vmax.xlane.f32.xlu0 %v1854_v27  ;;  %v1837_v28 = vpop.f32.mrb[34].mxu1 }
 0xa8f   : > { %v2856_v29 = vpop.f32.mrb[35].mxu1  ;;  %v1847_v17 = vadd.f32 %v1843_v24, %v850_v62 }
 0xa91   : > { %v1857_v30 = vsel %vm938_vm2, %v1847_v17, -inf }
 0xa92   : > { %1858 = vmax.xlane.f32.xlu0 %v1857_v30 }
 0xa9b   : > { %1897 = vrot.lane.b32.xlu1 %v4103_v36, %s4409_s17 }
 0xaa4   : > { %v1850_v31 = vpop.xlane.xlu0 %1849 }
 0xaa5   : > { %v1860_v32 = vsub.f32 %v1844_v6, %v1850_v31 }
 0xaa7   : > { %v1864_v33 = vmul.f32 1.442695, %v1860_v32 }
 0xaa9   : > { %3088 = vpow2.f32 %v1864_v33 }
 0xab3   : > { %v3089_v34 = vpop.eup %3088 }
 0xab4   : > { %v1872_v35 = vsel %vm938_vm2, %v3089_v34, 0.0 }
 0xabf   : > { %1873 = vadd.xlane.f32.xlu1 %v1872_v35 }
 0xb17   : > { %v1853_v37 = vpop.xlane.xlu1 %1852 }
 0xb18   : > { %v1861_v38 = vsub.f32 %v1845_v14, %v1853_v37 }
 0xb1a   : > { %v1866_v40 = vmul.f32 1.442695, %v1861_v38 }
 0xb1b   : > { %v1856_v41 = vpop.xlane.xlu0 %1855  ;;  %v1898_v42 = vpop.permute.xlu1 %1897 }
 0xb1c   : > { %3090 = vpow2.f32 %v1866_v40  ;;  %v1862_v44 = vsub.f32 %v1846_v22, %v1856_v41  ;;  %v1903_v45 = vsel %vm1193_vm3, %v1898_v42, 0  ;;  %v2676_v42 = vld [vmem:[#allocation16] ss:$0 sm:$0xff] }
 0xb1d   : > { %2858 = vmatpush3.bf16.msra.mxu0 %v1903_v45 }
 0xb1e   : > { %v1868_v46 = vmul.f32 1.442695, %v1862_v44  ;;  %2869 = vmatprep.subr.bf16.mxu0 %v3489_v0 }
 0xb1f   : > { %v1859_v36 = vpop.xlane.xlu0 %1858 }
 0xb20   : > { %3092 = vpow2.f32 %v1868_v46  ;;  %v1863_v47 = vsub.f32 %v1847_v17, %v1859_v36 }
 0xb22   : > { %v1870_v48 = vmul.f32 1.442695, %v1863_v47 }
 0xb24   : > { %3094 = vpow2.f32 %v1870_v48 }
 0xb26   : > { %v3091_v49 = vpop.eup %3090 }
 0xb27   : > { %v1875_v50 = vsel %vm938_vm2, %v3091_v49, 0.0 }
 0xb28   : > { %1876 = vadd.xlane.f32.xlu0 %v1875_v50 }
 0xb2a   : > { %v3093_v51 = vpop.eup %3092 }
 0xb2b   : > { %v1878_v53 = vsel %vm938_vm2, %v3093_v51, 0.0 }
 0xb2c   : > { %1879 = vadd.xlane.f32.xlu1 %v1878_v53 }
 0xb2e   : > { %v3095_v54 = vpop.eup %3094 }
 0xb2f   : > { %v1881_v55 = vsel %vm938_vm2, %v3095_v54, 0.0 }
 0xb30   : > { %1882 = vadd.xlane.f32.xlu0 %v1881_v55 }
 0xb3d   : > { %1995 = vrot.lane.b32.xlu1 %v4114_v43, %s4409_s17 }
 0xb41   : > { %2044 = vrot.lane.b32.xlu1 %v4125_v52, %s4409_s17 }
 0xb46   : > { %1946 = vrot.lane.b32.xlu0 %v4109_v39, %s4409_s17  ;;  %s4414_s17 = sld [smem:[#allocation37_spill]] }
 0xb4c   : > { %v1874_v56 = vpop.xlane.xlu1 %1873 }
 0xb4d   : > { %3096 = vrcp.f32 %v1874_v56  ;;  %v3064_v56 = vld [vmem:[%s4413_s3] sm:$0xff]  }
 0xb57   : > { %v3097_v57 = vpop.eup %3096 }
 0xb58   : > { %v1888_v58 = vmul.f32 %v3097_v57, %v3089_v34  ;;  %v3066_v57 = vld [vmem:[%s4414_s17] sm:$0xff]  }
 0xb5a   : > { %2092 = vst.msk [vmem:[%s4159_s21] sm:$0xff] %vm938_vm2, %v1888_v58  ;;  %v1892_v59 = vpack.c.bf16 %v1888_v58, %v1888_v58  ;;  %v3067_v58 = vld [vmem:[%s4414_s17 + $0x8] sm:$0xff]  }
 0xb5c   : > { %2860 = vmatmul.mubr.msk.bf16.vlgmr.msra.gmra.mrb[28].mxu0 %vm938_vm2, %v1892_v59 }
 0xb5d   : > { %2871 = vmatprep.mubr.msk.bf16.mxu0 %vm3490_vm0, %v3489_v0 }
 0xbb5   : > { %v1877_v43 = vpop.xlane.xlu0 %1876 }
 0xbb6   : > { %3098 = vrcp.f32 %v1877_v43 }
 0xbb9   : > { %v1880_v39 = vpop.xlane.xlu1 %1879 }
 0xbba   : > { %3100 = vrcp.f32 %v1880_v39 }
 0xbbd   : > { %v1996_v52 = vpop.permute.xlu1 %1995  ;;  %v1883_v60 = vpop.xlane.xlu0 %1882 }
 0xbbe   : > { %v2001_v61 = vsel %vm1193_vm3, %v1996_v52, 0  ;;  %3102 = vrcp.f32 %v1883_v60 }
 0xbbf   : > { %2870 = vmatpush3.bf16.msra.mxu0 %v2001_v61 }
 0xbc0   : > { %v3099_v62 = vpop.eup %3098  ;;  %2881 = vmatprep.subr.bf16.mxu0 %v3489_v0 }
 0xbc1   : > { %v1889_v63 = vmul.f32 %v3099_v62, %v3091_v49  ;;  %v1947_v1 = vpop.permute.xlu0 %1946  ;;  %v2045_v4 = vpop.permute.xlu1 %2044 }
 0xbc2   : > { %v1952_v2 = vsel %vm1193_vm3, %v1947_v1, 0  ;;  %v2050_v9 = vsel %vm1193_vm3, %v2045_v4, 0  ;;  %v3068_v1 = vld [vmem:[%s4414_s17 + $0x10] sm:$0xff]   ;;  %v2680_v4 = vld [vmem:[%s4415_s18] ss:$0 sm:$0xff]  ;;  %s4239_s18 = scalar_lea.hbm %s4417_s4, %s2697_s15 }
 0xbc3   : > { %2093 = vst.msk [vmem:[%s4159_s21 + $0x8] sm:$0xff] %vm938_vm2, %v1889_v63  ;;  %2864 = vmatpush3.bf16.msra.mxu1 %v1952_v2  ;;  %v1893_v5 = vpack.c.bf16 %v1889_v63, %v1889_v63  ;;  %v3069_v2 = vld [vmem:[%s4414_s17 + $0x18] sm:$0xff]  }
 0xbc4   : > { %v3101_v6 = vpop.eup %3100  ;;  %2875 = vmatprep.subr.bf16.mxu1 %v3489_v0 }
 0xbc5   : > { %v1890_v8 = vmul.f32 %v3101_v6, %v3093_v51 }
 0xbc6   : > { %2866 = vmatmul.mubr.msk.bf16.vlgmr.msra.gmra.mrb[36].mxu1 %vm938_vm2, %v1893_v5 }
 0xbc7   : > { %2094 = vst.msk [vmem:[%s4159_s21 + $0x10] sm:$0xff] %vm938_vm2, %v1890_v8  ;;  %2876 = vmatpush3.bf16.msra.mxu1 %v2050_v9  ;;  %v1894_v10 = vpack.c.bf16 %v1890_v8, %v1890_v8  ;;  %2877 = vmatprep.mubr.msk.bf16.mxu1 %vm3490_vm0, %v3489_v0 }
 0xbc8   : > { %v3103_v11 = vpop.eup %3102  ;;  %2889 = vmatprep.subr.bf16.mxu1 %v3489_v0 }
 0xbc9   : > { %v1891_v12 = vmul.f32 %v3103_v11, %v3095_v54  ;;  %2872 = vmatmul.mubr.msk.bf16.vlgmr.msra.gmra.mrb[32].mxu0 %vm938_vm2, %v1894_v10 }
 0xbca   : > { %2885 = vmatprep.mubr.msk.bf16.mxu0 %vm3490_vm0, %v3489_v0  ;;  %2882 = vmatpush3.bf16.msra.mxu0 %v3062_v19 }
 0xbcb   : > { %2095 = vst.msk [vmem:[%s4159_s21 + $0x18] sm:$0xff] %vm938_vm2, %v1891_v12  ;;  %v1895_v13 = vpack.c.bf16 %v1891_v12, %v1891_v12  ;;  %2883 = vmatprep.subr.bf16.mxu0 %v3489_v0 }
 0xbce   : > { %2878 = vmatmul.mubr.msk.bf16.vlgmr.msra.gmra.mrb[40].mxu1 %vm938_vm2, %v1895_v13  ;;  %2884 = vmatpush3.bf16.msra.mxu0 %v3063_v20 }
 0xbcf   : > { %2893 = vmatprep.mubr.msk.bf16.mxu1 %vm3490_vm0, %v3489_v0  ;;  %2897 = vmatprep.subr.bf16.mxu0 %v3489_v0 }
 0xbd0   : > { %2890 = vmatpush3.bf16.msra.mxu1 %v3064_v56 }
 0xbd1   : > { %2891 = vmatprep.subr.bf16.mxu1 %v3489_v0 }
 0xc2f   : > { %v1939_v14 = vpop.f32.mrb[28].mxu0 }
 0xc30   : > { %v2861_v15 = vpop.f32.mrb[29].mxu0 }
 0xc31   : > { %v1942_v3 = vpop.f32.mrb[30].mxu0 }
 0xc32   : > { %v2862_v16 = vpop.f32.mrb[31].mxu0 }
 0xc99   : > { %v1988_v21 = vpop.f32.mrb[36].mxu1 }
 0xc9a   : > { %2097 = vrot.lane.b32.xlu0 %v1988_v21, %s4410_s0  ;;  %v2867_v22 = vpop.f32.mrb[37].mxu1 }
 0xc9b   : > { %v1991_v23 = vpop.f32.mrb[38].mxu1 }
 0xc9c   : > { %v2868_v24 = vpop.f32.mrb[39].mxu1  ;;  %v2037_v25 = vpop.f32.mrb[32].mxu0 }
 0xc9d   : > { %2101 = vrot.lane.b32.xlu1 %v2037_v25, %s4411_s1  ;;  %v2873_v27 = vpop.f32.mrb[33].mxu0  ;;  %s3362_s1 = scalar_lea.vmem %s4241_s16, 512 }
 0xc9e   : > { %v2040_v28 = vpop.f32.mrb[34].mxu0  ;;  %p3363_p1 = scmp.ne.s32.totalorder %s4241_s16, %s3362_s1 }
 0xc9f   : > { %v2874_v29 = vpop.f32.mrb[35].mxu0 }
 0xca0   : > { %p3364_p0 = pnand %p3363_p1, %p4418_p13 }
 0xca1   : > { %v2086_v17 = vpop.f32.mrb[40].mxu1 }
 0xca2   : > { %2105 = vrot.lane.b32.xlu0 %v2086_v17, %s4412_s19  ;;  %v2879_v30 = vpop.f32.mrb[41].mxu1  ;;  %s4416_s19 = sld [smem:[#allocation38_spill]]  ;;  %p3365_p2 = pneg %p3364_p0 }
 0xca3   : > { %v2089_v31 = vpop.f32.mrb[42].mxu1 }
 0xca4   : > { %v2880_v32 = vpop.f32.mrb[43].mxu1 }
 0xd0c   : > { %v2098_v33 = vpop.permute.xlu0 %2097 }
 0xd0d   : > { %v2108_v35 = vsel %vm938_vm2, %v1939_v14, %v2098_v33 }
 0xd0f   : > { %v2102_v34 = vpop.permute.xlu1 %2101 }
 0xd10   : > { %v2109_v37 = vsel %vm1394_vm4, %v2108_v35, %v2102_v34 }
 0xd14   : > { %v2106_v38 = vpop.permute.xlu0 %2105 }
 0xd15   : > { %v2110_v40 = vsel %vm1396_vm5, %v2109_v37, %v2106_v38 }
 0xd16   : > { %v2111_v41 = vpack.c.bf16 %v2110_v40, %v2110_v40 }
 0xd18   : > { %2886 = vmatmul.mubr.msk.bf16.vlgmr.msra.gmra.mrb[36].mxu0 %vm877_vm1, %v2111_v41 }
 0xd19   : > { %2905 = vmatprep.mubr.msk.bf16.mxu0 %vm3490_vm0, %v3489_v0  ;;  %2898 = vmatpush3.bf16.msra.mxu0 %v3066_v57 }
 0xd1a   : > { %2899 = vmatprep.subr.bf16.mxu0 %v3489_v0 }
 0xd1d   : > { %2900 = vmatpush3.bf16.msra.mxu0 %v3067_v58 }
 0xd1e   : > { %2901 = vmatprep.subr.bf16.mxu0 %v3489_v0 }
 0xd21   : > { %2902 = vmatpush3.bf16.msra.mxu0 %v3068_v1 }
 0xd22   : > { %2903 = vmatprep.subr.bf16.mxu0 %v3489_v0  ;;  %v2684_v0 = vld [vmem:[%s4416_s19] ss:$0 sm:$0xff]  ;;  %s3499_s19 = smov [#allocation18]  }
 0xd25   : > { %2904 = vmatpush3.bf16.msra.mxu0 %v3069_v2 }
 0xdeb   : > { %v2172_v44 = vpop.f32.mrb[36].mxu0 }
 0xdec   : > { %v2173_v45 = vadd.f32 %v2676_v42, %v2172_v44  ;;  %v2887_v46 = vpop.f32.mrb[37].mxu0 }
 0xded   : > { %v2175_v36 = vpop.f32.mrb[38].mxu0 }
 0xdee   : > { %v2178_v47 = vadd.f32 %v2173_v45, %v4063_v7  ;;  %v2888_v48 = vpop.f32.mrb[39].mxu0  ;;  %v3065_v7 = vld [vmem:[%s4413_s3 + $0x8] sm:$0xff]   ;;  %s3366_s3 = sshll.u32 %s3499_s19, 4  ;;  %s3367_s3 = int_to_ptr.vmem [resolvable:$false] %s3366_s3 }
 0xdef   : > { %2892 = vmatpush3.bf16.msra.mxu1 %v3065_v7  ;;  %s3368_s21 = scalar_lea.vmem %s3367_s3, 1024  ;;  %p3369_p3 = scmp.lt.s32.totalorder %s4241_s16, %s3367_s3 }
 0xdf0   : > { %v2179_v49 = vsel %vm877_vm1, %v2178_v47, 0.0  ;;  %p3370_p4 = scmp.lt.s32.totalorder %s3368_s21, %s3362_s1 }
 0xdf1   : > { %2180 = vadd.xlane.f32.xlu1 %v2179_v49 }
 0xdf2   : > { %p3371_p10 = por %p3370_p4, %p3369_p3 }
 0xdf4   : > { %p3372_p11 = pnand %p3371_p10, %p3365_p2 }
 0xe7e   : > { %v2181_v50 = vpop.xlane.xlu1 %2180 }
 0xe7f   : > { %v2182_v51 = vmul.f32 0.03125, %v2181_v50 }
 0xe81   : > { %v2183_v53 = vsub.f32 %v2178_v47, %v2182_v51 }
 0xe83   : > { %v2184_v54 = vmul.f32 %v2183_v53, %v2183_v53 }
 0xe85   : > { %v2185_v55 = vsel %vm877_vm1, %v2184_v54, 0.0 }
 0xe86   : > { %2186 = vadd.xlane.f32.xlu0 %v2185_v55 }
 0xf13   : > { %v2187_v59 = vpop.xlane.xlu0 %2186 }
 0xf14   : > { %v2188_v43 = vmul.f32 0.03125, %v2187_v59 }
 0xf16   : > { %v2189_v39 = vadd.f32 1e-06, %v2188_v43 }
 0xf18   : > { %3104 = vrsqrt.f32 %v2189_v39 }
 0xf22   : > { %v3105_v52 = vpop.eup %3104 }
 0xf23   : > { %v2191_v60 = vmul.f32 %v3105_v52, %v2183_v53 }
 0xf25   : > { %v2192_v61 = vmul.f32 %v4089_v26, %v2191_v60 }
 0xf27   : > { %v2193_v62 = vadd.f32 %v4094_v18, %v2192_v61 }
 0xf29   : > { %v2194_v63 = vpack.c.bf16 %v2193_v62, %v2193_v62 }
 0xf2b   : > { %2894 = vmatmul.mubr.msk.bf16.vlgmr.msra.gmra.mrb[44].mxu1 %vm877_vm1, %v2194_v63 }
 0xffe   : > { %v2255_v5 = vpop.f32.mrb[44].mxu1 }
 0xfff   : > { %v2256_v6 = vadd.f32 %v2680_v4, %v2255_v5  ;;  %v2895_v8 = vpop.f32.mrb[45].mxu1 }
0x1000   : > { %v2258_v9 = vpop.f32.mrb[46].mxu1 }
0x1001   : > { %v2261_v10 = vmax.f32 %v2256_v6, 0.0  ;;  %v2896_v11 = vpop.f32.mrb[47].mxu1 }
0x1003   : > { %v2262_v12 = vpack.c.bf16 %v2261_v10, %v2261_v10 }
0x1005   : > { %2906 = vmatmul.mubr.msk.bf16.vlgmr.msra.gmra.mrb[40].mxu0 %vm2302_vm6, %v2262_v12 }
0x10d8   : > { %v2340_v13 = vpop.f32.mrb[40].mxu0 }
0x10d9   : > { %v2341_v14 = vadd.f32 %v2684_v0, %v2340_v13  ;;  %v2907_v15 = vpop.f32.mrb[41].mxu0 }
0x10da   : > { %v2343_v3 = vpop.f32.mrb[42].mxu0 }
0x10db   : > { %v2908_v16 = vpop.f32.mrb[43].mxu0  ;;  %v2346_v19 = vadd.f32 %v2341_v14, %v2178_v47 }
0x10dd   : > { %v2347_v20 = vsel %vm877_vm1, %v2346_v19, 0.0 }
0x10de   : > { %2348 = vadd.xlane.f32.xlu0 %v2347_v20 }
0x116b   : > { %v2349_v21 = vpop.xlane.xlu0 %2348 }
0x116c   : > { %v2350_v22 = vmul.f32 0.03125, %v2349_v21 }
0x116e   : > { %v2351_v23 = vsub.f32 %v2346_v19, %v2350_v22 }
0x1170   : > { %v2352_v24 = vmul.f32 %v2351_v23, %v2351_v23 }
0x1172   : > { %v2353_v25 = vsel %vm877_vm1, %v2352_v24, 0.0 }
0x1173   : > { %2354 = vadd.xlane.f32.xlu1 %v2353_v25 }
0x1174   : > { %3375 = shalt.err (!%p3372_p11)
}
0x1175   : > { %s3376_s15 = scalar_lea.hbm %s4239_s18, 512  ;;  %s3380_s19 = scalar_lea.hbm %s4417_s4, 1024 }
0x1176   : > { %p3377_p8 = scmp.ne.s32.totalorder %s4239_s18, %s3376_s15  ;;  %p3381_p6 = scmp.lt.u32.totalorder %s4239_s18, %s4417_s4 }
0x1177   : > { %p3382_p9 = scmp.lt.u32.totalorder %s3380_s19, %s3376_s15  ;;  %p3384_p1 = scmp.lt.u32.totalorder %s3376_s15, %s4239_s18 }
0x1178   : > { %p3378_p5 = pnand %p3377_p8, %p4418_p13 }
0x1179   : > { %p3383_p12 = por %p3382_p9, %p3381_p6 }
0x117a   : > { %p3379_p7 = pneg %p3378_p5 }
0x117b   : > { %p3385_p0 = por %p3384_p1, %p3383_p12 }
0x117d   : > { %p3386_p2 = pnand %p3385_p0, %p3379_p7 }
0x117f   : > { %3389 = shalt.err (!%p3386_p2)
}
0x1180   : > { %s3500_s1 = smov 128   ;;  %s4419_s21 = scalar_lea.sflag [#allocation19], %s3914_s6 }
0x1181   : > { %2944 = dma.vmem_to_hbm [thread:$0]  (%p4418_p13), %s4241_s16, 512, %s4239_s18, %s4419_s21, %s3500_s1, %s3500_s1, %s4410_s0  }
0x1182   : > { %s2692_s14 = sshll.u32 %s3633_s29, 7  ;;  %s4420_s15 = sshll.u32 %s3914_s6, 3 }
0x1183   : > { %s822_s20 = scalar_lea.vmem [#allocation17], %s4420_s15  ;;  %s4421_s4 = sld [smem:[#allocation41_spill]] }
0x1184   : > { %s2382_s30 = sshll.u32 %s822_s20, 4  ;;  %s2364_s29 = scalar_lea.sflag [#allocation4], %s3914_s6  ;;  %s4278_s30 = int_to_ptr.vmem [resolvable:$true] %s2382_s30 }
0x1185   : > { %s3390_s0 = scalar_lea.vmem %s4278_s30, 128  ;;  %s3501_s16 = smov [#allocation17]  }
0x1186   : > { %p3391_p3 = scmp.ne.s32.totalorder %s4278_s30, %s3390_s0  ;;  %s3394_s18 = sshll.u32 %s3501_s16, 4  ;;  %s3395_s18 = int_to_ptr.vmem [resolvable:$false] %s3394_s18 }
0x1187   : > { %s3396_s1 = scalar_lea.vmem %s3395_s18, 256  ;;  %p3397_p11 = scmp.lt.s32.totalorder %s4278_s30, %s3395_s18 }
0x1188   : > { %p3392_p4 = pnand %p3391_p3, %p4418_p13  ;;  %p3398_p8 = scmp.lt.s32.totalorder %s3396_s1, %s3390_s0 }
0x1189   : > { %s4276_s7 = scalar_lea.hbm %s4421_s4, %s2692_s14 }
0x118a   : > { %p3393_p10 = pneg %p3392_p4  ;;  %p3399_p5 = por %p3398_p8, %p3397_p11 }
0x118c   : > { %p3400_p7 = pnand %p3399_p5, %p3393_p10 }
0x1200   : > { %v2355_v27 = vpop.xlane.xlu1 %2354 }
0x1201   : > { %v2356_v28 = vmul.f32 0.03125, %v2355_v27 }
0x1203   : > { %v2357_v29 = vadd.f32 1e-06, %v2356_v28 }
0x1205   : > { %3106 = vrsqrt.f32 %v2357_v29 }
0x120f   : > { %v3107_v17 = vpop.eup %3106 }
0x1210   : > { %v2359_v30 = vmul.f32 %v3107_v17, %v2351_v23 }
0x1212   : > { %v2360_v31 = vmul.f32 %v4089_v26, %v2359_v30 }
0x1214   : > { %v2361_v32 = vadd.f32 %v4094_v18, %v2360_v31 }
0x1216   : > { %2362 = vst.msk [vmem:[%s822_s20] sm:$0xff] %vm877_vm1, %v2361_v32 }
0x1217   : > { %3403 = shalt.err (!%p3400_p7)
}
0x1218   : > { %s3404_s6 = scalar_lea.hbm %s4276_s7, 128  ;;  %s3408_s15 = scalar_lea.hbm %s4421_s4, 256 }
0x1219   : > { %p3405_p6 = scmp.ne.s32.totalorder %s4276_s7, %s3404_s6  ;;  %p3409_p1 = scmp.lt.u32.totalorder %s4276_s7, %s4421_s4 }
0x121a   : > { %p3410_p0 = scmp.lt.u32.totalorder %s3408_s15, %s3404_s6  ;;  %p3412_p3 = scmp.lt.u32.totalorder %s3404_s6, %s4276_s7 }
0x121b   : > { %p3406_p9 = pnand %p3405_p6, %p4418_p13 }
0x121c   : > { %p3411_p2 = por %p3410_p0, %p3409_p1 }
0x121d   : > { %p3407_p12 = pneg %p3406_p9 }
0x121e   : > { %p3413_p4 = por %p3412_p3, %p3411_p2 }
0x1220   : > { %p3414_p10 = pnand %p3413_p4, %p3407_p12 }
0x1222   : > { %3417 = shalt.err (!%p3414_p10)
}
0x1223   : > { %2943 = dma.vmem_to_hbm [thread:$0]  (%p4418_p13), %s4278_s30, 128, %s4276_s7, %s2364_s29  }
0x1224 PF: > { %s2410_s3 = sand.u32 1, %s3464_s2   ;;  %p4422_p11 = scmp.ne.s32.totalorder %s4391_s28, 0 }
0x1225   : > { %p4423_p8 = scmp.ge.s32.totalorder %s3476_s27, 2  ;;  %s2411_s0 = scalar_lea.sflag [#allocation4], %s2410_s3 }
0x1227   : > { %p2977_p5 = pnand %p4423_p8, %p4422_p11 }
0x1229   : > { %3455 = dma.done.wait (!%p2977_p5), %s2411_s0, 128  }
0x122a   : > { %3457 = vsyncadd (!%p2977_p5), %s2411_s0, 4294967168  ;;  %s2420_s16 = scalar_lea.sflag [#allocation19], %s2410_s3 }
0x122b   : > { %3459 = dma.done.wait (!%p2977_p5), %s2420_s16, 512  }
0x122c   : > { %3461 = vsyncadd (!%p2977_p5), %s2420_s16, 4294966784  ;;  %p42_p13 = scmp.ge.s32.totalorder %s3838_s5, 4   ;;  %s4424_s2 = smov %s3468_s25 }
0x122d   : > { %s4425_s25 = smov %s3472_s26  ;;  %s4426_s26 = smov %s3849_s24 }
0x122e   : > { %s4427_s27 = smov %s3838_s5  ;;  %44 = sbr.rel (!%p42_p13) target bundleno = 28 (0x1c), region = 203 }
0x1235   :  { %2425 = vsyncpa [#allocation3], 1 }
0x1236   :  { %2427 = vsyncpa [#allocation3 + $0x1], 1 }
0x1237   :  { %2428 = vsyncpa [#allocation6], 1 }
0x1238   :  { %2429 = vsyncpa [#allocation9], 1 }
0x1239   :  { %2430 = vsyncpa [#allocation12], 1 }
0x123a   :  { %2431 = vsyncpa [#allocation15], 1 }
0x123b   :  { %2432 = vsyncpa [#allocation4], 1 }
0x123c   :  { %2434 = vsyncpa [#allocation4 + $0x1], 1 }
0x123d   :  { %2435 = vsyncpa [#allocation19], 1 }
0x123e   :  { %2437 = vsyncpa [#allocation19 + $0x1], 1 }

</bundles_post_ra>
